<compile_context>
chip_gen: v6e
topology: v6e:2x2x1
jax: 0.10.0
libtpu: 0.0.40
codegen_flags: <defaults>
</compile_context>

<pallas_src>
import functools

import jax
import jax.numpy as jnp
from jax import lax
from jax.experimental import pallas as pl
from jax.experimental.pallas import tpu as pltpu


def _vmem_limit_bytes(default=32 << 20):
    """Scoped-VMEM limit with headroom, sized from the actual chip when queryable."""
    try:
        cap = int(getattr(pltpu.get_tpu_info(), "vmem_capacity_bytes", 0))
        if cap > 0:
            # leave ~8 MiB headroom, never below 16 MiB, cap at ~100 MiB (v5e/v6e advice)
            return min(max(cap - (8 << 20), 16 << 20), 100 << 20)
    except Exception:
        pass
    return default


def _lstm_recurrence_kernel(x_ref, wih_ref, whh_ref, b_ref, hs_ref, gx_scr, c_scr,
                            *, T, B, H):
    """Fused input projection + serial LSTM recurrence, single invocation.

    x_ref   : (T*B, E) bf16  time-major flattened LSTM inputs
    wih_ref : (E, 4H)  bf16  weight_ih_l0^T
    whh_ref : (H, 4H)  f32   weight_hh_l0^T (f32: it sits on the serial h-chain)
    b_ref   : (1, 4H)  f32   b_ih + b_hh
    hs_ref  : (T*B, H) f32   OUT: all hidden states (consumed by the projection kernel)
    gx_scr  : (T*B, 4H) f32  scratch: precomputed input projection (+ gate bias)
    c_scr   : (B, H)   f32   scratch: cell state (VMEM-resident, bounds live vregs)
    """
    # (1) Input projection for ALL timesteps in one bf16 MXU call, off the serial chain;
    #     gate bias folded in here (not re-added every step).
    gx_scr[...] = (jnp.dot(x_ref[...], wih_ref[...], preferred_element_type=jnp.float32)
                   + b_ref[...])
    c_scr[...] = jnp.zeros_like(c_scr)

    def step(t, h_prev):
        row = pl.multiple_of(t * B, B)                   # sublane-aligned (B % 8 == 0)
        # Only the hidden->gates matmul stays on the serial dependence chain (f32 MXU).
        gates = gx_scr[pl.ds(row, B), :] + jnp.dot(
            h_prev, whh_ref[...], preferred_element_type=jnp.float32)   # (B, 4H) f32

        # Lane-aligned per-gate activations (H % 128 == 0): one sigmoid over the i|f
        # halves, one tanh over g, one sigmoid over o -> B*4H transcendental elements
        # per step (half of the old full-width where(tanh, sigmoid) trick).
        i_f = jax.nn.sigmoid(gates[:, 0:2 * H])
        i_g = i_f[:, 0:H]
        f_g = i_f[:, H:2 * H]
        g_g = jnp.tanh(gates[:, 2 * H:3 * H])
        o_g = jax.nn.sigmoid(gates[:, 3 * H:4 * H])

        c_new = f_g * c_scr[...] + i_g * g_g
        h_new = o_g * jnp.tanh(c_new)

        c_scr[...] = c_new                               # c state kept in VMEM scratch
        hs_ref[pl.ds(row, B), :] = h_new
        return h_new

    h0 = jnp.zeros((B, H), jnp.float32)
    # Full unroll only for short sequences; partial unroll bounds vreg pressure/code size.
    lax.fori_loop(0, T, step, h0, unroll=(True if T <= 8 else 4))


def _projection_kernel(hs_ref, wout_ref, bout_ref, out_ref):
    """One (B, H) x (H, tn) output-projection tile: bf16 MXU inputs, f32 accumulate."""
    hs_bf16 = hs_ref[...].astype(jnp.bfloat16)
    out_ref[...] = (jnp.dot(hs_bf16, wout_ref[...], preferred_element_type=jnp.float32)
                    + bout_ref[...])


def lstm_linear_pallas(x_tm2d, w_ih_t, w_hh_t, b_gates, w_out_t, b_out, *, T, B,
                       v_tile=128):
    """x_tm2d: (T*B, E) time-major flattened.  Returns batch-first logits (B, T, V)."""
    TB, E = x_tm2d.shape
    assert TB == T * B
    H = w_hh_t.shape[0]
    V = w_out_t.shape[1]
    assert B % 8 == 0, "pad batch to a multiple of 8 (sublane alignment)"
    assert H % 128 == 0, "pad hidden_size to a multiple of 128 (lane-aligned gate slices)"
    # TODO(synk): pad V (and mask the tail tile) for vocab sizes not a multiple of v_tile.
    assert V % v_tile == 0

    vmem_limit = _vmem_limit_bytes()
    vmem = pl.BlockSpec(memory_space=pltpu.MemorySpace.VMEM)

    # ---- kernel 1: input projection + serial LSTM recurrence (single invocation) ------
    rec_kernel = functools.partial(_lstm_recurrence_kernel, T=T, B=B, H=H)
    hs = pl.pallas_call(
        rec_kernel,
        out_shape=jax.ShapeDtypeStruct((TB, H), jnp.float32),
        in_specs=[vmem] * 4,                 # recurrence operands are VMEM-resident
        out_specs=vmem,
        scratch_shapes=[
            pltpu.VMEM((TB, 4 * H), jnp.float32),   # gx: precomputed input projection
            pltpu.VMEM((B, H), jnp.float32),        # c state
        ],
        compiler_params=pltpu.CompilerParams(vmem_limit_bytes=vmem_limit),
    )(x_tm2d.astype(jnp.bfloat16), w_ih_t.astype(jnp.bfloat16), w_hh_t, b_gates)

    # ---- kernel 2: V-tiled, parallel output projection, writes batch-first -----------
    # TODO(synk): at large B consider row tiles > B (time-major out + fused transpose)
    # if the M=B MXU tile underfeeds the MXU.
    n_v = V // v_tile
    logits_flat = pl.pallas_call(
        _projection_kernel,
        out_shape=jax.ShapeDtypeStruct((B, T * V), jnp.float32),
        grid=(T, n_v),
        in_specs=[
            pl.BlockSpec((B, H), lambda t, j: (t, 0)),        # hs rows of timestep t
            pl.BlockSpec((H, v_tile), lambda t, j: (0, j)),   # streamed W_out tile (bf16)
            pl.BlockSpec((1, v_tile), lambda t, j: (0, j)),   # bias tile
        ],
        # Batch-first write: rows 0..B-1, columns [t*V + j*v_tile, ...) == logits[:, t, vtile].
        out_specs=pl.BlockSpec((B, v_tile), lambda t, j: (0, t * n_v + j)),
        compiler_params=pltpu.CompilerParams(
            dimension_semantics=("parallel", "parallel"),
            vmem_limit_bytes=vmem_limit),
    )(hs, w_out_t.astype(jnp.bfloat16), b_out)

    return logits_flat.reshape(B, T, V)      # pure reshape -- no transpose


def init_params(key, embed_size, hidden_size, vocab_size):
    """Deterministic synthetic parameters mirroring the nn.Module shapes."""
    ks = jax.random.split(key, 7)
    s = 1.0 / jnp.sqrt(hidden_size)
    return {
        # nn.Embedding(vocab_size, embed_size)
        "embedding": jax.random.normal(ks[0], (vocab_size, embed_size), jnp.float32),
        # nn.LSTM: weight_ih_l0 (4H,E), weight_hh_l0 (4H,H), biases (4H,)
        "w_ih": jax.random.uniform(ks[1], (4 * hidden_size, embed_size), jnp.float32, -s, s),
        "w_hh": jax.random.uniform(ks[2], (4 * hidden_size, hidden_size), jnp.float32, -s, s),
        "b_ih": jax.random.uniform(ks[3], (4 * hidden_size,), jnp.float32, -s, s),
        "b_hh": jax.random.uniform(ks[4], (4 * hidden_size,), jnp.float32, -s, s),
        # nn.Linear(hidden_size, vocab_size)
        "w_out": jax.random.uniform(ks[5], (vocab_size, hidden_size), jnp.float32, -s, s),
        "b_out": jax.random.uniform(ks[6], (vocab_size,), jnp.float32, -s, s),
    }


def decoder_rnn_forward(params, features, captions):
    """Mirrors DecoderRNN.forward.

    features: (B, embed_size) float32
    captions: (B, T_cap) int32
    returns : (B, T_cap, vocab_size) float32  (LSTM input = [features, embed(captions[:, :-1])])
    """
    # Glue in plain JAX: embedding gather of captions[:, :-1] and concat with features.
    word_emb = jnp.take(params["embedding"], captions[:, :-1], axis=0)      # (B, T-1, E)
    x = jnp.concatenate([features[:, None, :], word_emb], axis=1)           # (B, T, E)
    B, T, E = x.shape
    x_tm2d = jnp.transpose(x, (1, 0, 2)).reshape(T * B, E)                  # (T*B, E)

    w_ih_t = params["w_ih"].T                                               # (E, 4H)
    w_hh_t = params["w_hh"].T                                               # (H, 4H)
    b_gates = (params["b_ih"] + params["b_hh"])[None, :]                    # (1, 4H)
    w_out_t = params["w_out"].T                                             # (H, V)
    b_out = params["b_out"][None, :]                                        # (1, V)

    return lstm_linear_pallas(x_tm2d, w_ih_t, w_hh_t, b_gates, w_out_t, b_out,
                              T=T, B=B)                                     # (B, T, V)


def _reference_forward(params, features, captions):
    """Pure-JAX reference mirroring the kernel's mixed precision (bf16 off-chain matmuls)."""
    H = params["w_hh"].shape[1]
    word_emb = jnp.take(params["embedding"], captions[:, :-1], axis=0)
    x = jnp.concatenate([features[:, None, :], word_emb], axis=1)           # (B, T, E)
    B = x.shape[0]
    w_ih_t = params["w_ih"].T.astype(jnp.bfloat16)
    w_hh_t = params["w_hh"].T
    b = params["b_ih"] + params["b_hh"]
    w_out_t = params["w_out"].T.astype(jnp.bfloat16)

    x_tm = jnp.transpose(x, (1, 0, 2)).astype(jnp.bfloat16)                 # (T, B, E)
    gx = jnp.einsum("tbe,eg->tbg", x_tm, w_ih_t,
                    preferred_element_type=jnp.float32) + b                 # (T, B, 4H)

    def step(carry, gx_t):
        h, c = carry
        g = gx_t + jnp.dot(h, w_hh_t, precision=lax.Precision.HIGHEST)
        i = jax.nn.sigmoid(g[:, 0:H])
        f = jax.nn.sigmoid(g[:, H:2 * H])
        gg = jnp.tanh(g[:, 2 * H:3 * H])
        o = jax.nn.sigmoid(g[:, 3 * H:4 * H])
        c = f * c + i * gg
        h = o * jnp.tanh(c)
        return (h, c), h

    h0 = jnp.zeros((B, H), jnp.float32)
    c0 = jnp.zeros((B, H), jnp.float32)
    _, hs = lax.scan(step, (h0, c0), gx)                                    # (T, B, H)
    logits = jnp.einsum("tbh,hv->tbv", hs.astype(jnp.bfloat16), w_out_t,
                        preferred_element_type=jnp.float32) + params["b_out"]
    return jnp.transpose(logits, (1, 0, 2))                                 # (B, T, V)


if __name__ == "__main__":
    # Small but alignment-friendly shapes: B % 8 == 0, H % 128 == 0, V % 128 == 0.
    embed_size, hidden_size, vocab_size = 128, 128, 256
    batch, cap_len = 8, 8   # LSTM seq len = 1 (feature) + (cap_len - 1) = 8

    key = jax.random.PRNGKey(0)
    k_params, k_feat, k_cap = jax.random.split(key, 3)

    params = init_params(k_params, embed_size, hidden_size, vocab_size)
    features = jax.random.normal(k_feat, (batch, embed_size), jnp.float32)
    captions = jax.random.randint(k_cap, (batch, cap_len), 0, vocab_size, jnp.int32)

    fwd = jax.jit(decoder_rnn_forward)
    out = jax.block_until_ready(fwd(params, features, captions))

    ref = jax.block_until_ready(_reference_forward(params, features, captions))
    assert out.shape == (batch, cap_len, vocab_size), out.shape
    max_err = float(jnp.max(jnp.abs(out - ref)))
    assert jnp.allclose(out, ref, atol=2e-3, rtol=2e-3), max_err

    print("KERNEL_OK")
</pallas_src>

<mosaic_0001>
module attributes {stable_mosaic.version = 11 : i64} {
  func.func @_projection_kernel(%arg0: i32, %arg1: i32, %arg2: memref<8x128xf32, #tpu.memory_space<vmem>>, %arg3: memref<128x128xbf16, #tpu.memory_space<vmem>>, %arg4: memref<1x128xf32, #tpu.memory_space<vmem>>, %arg5: memref<8x128xf32, #tpu.memory_space<vmem>>) attributes {dimension_semantics = [#tpu.dimension_semantics<parallel>, #tpu.dimension_semantics<parallel>], iteration_bounds = array<i64: 8, 2>, scalar_prefetch = 0 : i64, scratch_operands = 0 : i64, tpu.core_type = #tpu.core_type<tc>, window_params = [{transform_indices = @transform_0, window_bounds = array<i64: 8, 128>}, {transform_indices = @transform_1, window_bounds = array<i64: 128, 128>}, {transform_indices = @transform_2, window_bounds = array<i64: 1, 128>}, {transform_indices = @transform_3, window_bounds = array<i64: 8, 128>}]} {
    %c0 = arith.constant 0 : index
    %c0_0 = arith.constant 0 : index
    %0 = vector.load %arg2[%c0, %c0_0] : memref<8x128xf32, #tpu.memory_space<vmem>>, vector<8x128xf32>
    %1 = arith.truncf %0 : vector<8x128xf32> to vector<8x128xbf16>
    %c0_1 = arith.constant 0 : index
    %c0_2 = arith.constant 0 : index
    %2 = vector.load %arg3[%c0_1, %c0_2] : memref<128x128xbf16, #tpu.memory_space<vmem>>, vector<128x128xbf16>
    %cst = arith.constant dense<0.000000e+00> : vector<8x128xf32>
    %3 = tpu.matmul %1, %2, %cst {dimension_numbers = #tpu.dot_dimension_numbers<[1], [0], [0], [1], [0, 0, 1, 1], [], []>} : vector<8x128xbf16>, vector<128x128xbf16>, vector<8x128xf32> -> vector<8x128xf32>
    %c0_3 = arith.constant 0 : index
    %c0_4 = arith.constant 0 : index
    %4 = vector.load %arg4[%c0_3, %c0_4] : memref<1x128xf32, #tpu.memory_space<vmem>>, vector<1x128xf32>
    %5 = vector.broadcast %4 : vector<1x128xf32> to vector<8x128xf32>
    %6 = arith.addf %3, %5 : vector<8x128xf32>
    %c0_5 = arith.constant 0 : index
    %c0_6 = arith.constant 0 : index
    %7 = vector.load %arg5[%c0_5, %c0_6] : memref<8x128xf32, #tpu.memory_space<vmem>>, vector<8x128xf32>
    tpu.vector_store %arg5[%c0_5, %c0_6], %6 {strides = array<i32>} : memref<8x128xf32, #tpu.memory_space<vmem>>, vector<8x128xf32>,
    return
  }
  func.func @transform_0(%arg0: i32, %arg1: i32) -> (i32, i32) {
    %c0_i32 = arith.constant 0 : i32
    %c0_i32_0 = arith.constant 0 : i32
    return %arg0, %c0_i32 : i32, i32
  }
  func.func @transform_1(%arg0: i32, %arg1: i32) -> (i32, i32) {
    %c0_i32 = arith.constant 0 : i32
    %c0_i32_0 = arith.constant 0 : i32
    return %c0_i32, %arg1 : i32, i32
  }
  func.func @transform_2(%arg0: i32, %arg1: i32) -> (i32, i32) {
    %c0_i32 = arith.constant 0 : i32
    %c0_i32_0 = arith.constant 0 : i32
    return %c0_i32, %arg1 : i32, i32
  }
  func.func @transform_3(%arg0: i32, %arg1: i32) -> (i32, i32) {
    %c2_i32 = arith.constant 2 : i32
    %0 = arith.muli %arg0, %c2_i32 : i32
    %1 = arith.addi %0, %arg1 : i32
    %c0_i32 = arith.constant 0 : i32
    %c0_i32_0 = arith.constant 0 : i32
    return %c0_i32, %1 : i32, i32
  }
}

module attributes {stable_mosaic.version = 11 : i64} {
  func.func @_lstm_recurrence_kernel(%arg0: memref<64x128xbf16, #tpu.memory_space<vmem>>, %arg1: memref<128x512xbf16, #tpu.memory_space<vmem>>, %arg2: memref<128x512xf32, #tpu.memory_space<vmem>>, %arg3: memref<1x512xf32, #tpu.memory_space<vmem>>, %arg4: memref<64x128xf32, #tpu.memory_space<vmem>>, %arg5: memref<64x512xf32, #tpu.memory_space<vmem>>, %arg6: memref<8x128xf32, #tpu.memory_space<vmem>>) attributes {dimension_semantics = [], scalar_prefetch = 0 : i64, scratch_operands = 2 : i64, tpu.core_type = #tpu.core_type<tc>} {
    %c0 = arith.constant 0 : index
    %c0_0 = arith.constant 0 : index
    %0 = vector.load %arg0[%c0, %c0_0] : memref<64x128xbf16, #tpu.memory_space<vmem>>, vector<64x128xbf16>
    %c0_1 = arith.constant 0 : index
    %c0_2 = arith.constant 0 : index
    %1 = vector.load %arg1[%c0_1, %c0_2] : memref<128x512xbf16, #tpu.memory_space<vmem>>, vector<128x512xbf16>
    %cst = arith.constant dense<0.000000e+00> : vector<64x512xf32>
    %2 = tpu.matmul %0, %1, %cst {dimension_numbers = #tpu.dot_dimension_numbers<[1], [0], [0], [1], [0, 0, 1, 1], [], []>} : vector<64x128xbf16>, vector<128x512xbf16>, vector<64x512xf32> -> vector<64x512xf32>
    %c0_3 = arith.constant 0 : index
    %c0_4 = arith.constant 0 : index
    %3 = vector.load %arg3[%c0_3, %c0_4] : memref<1x512xf32, #tpu.memory_space<vmem>>, vector<1x512xf32>
    %4 = vector.broadcast %3 : vector<1x512xf32> to vector<64x512xf32>
    %5 = arith.addf %2, %4 : vector<64x512xf32>
    %c0_5 = arith.constant 0 : index
    %c0_6 = arith.constant 0 : index
    %6 = vector.load %arg5[%c0_5, %c0_6] : memref<64x512xf32, #tpu.memory_space<vmem>>, vector<64x512xf32>
    tpu.vector_store %arg5[%c0_5, %c0_6], %5 {strides = array<i32>} : memref<64x512xf32, #tpu.memory_space<vmem>>, vector<64x512xf32>,
    %cst_7 = arith.constant 0.000000e+00 : f32
    %7 = vector.broadcast %cst_7 : f32 to vector<8x128xf32>
    %c0_8 = arith.constant 0 : index
    %c0_9 = arith.constant 0 : index
    %8 = vector.load %arg6[%c0_8, %c0_9] : memref<8x128xf32, #tpu.memory_space<vmem>>, vector<8x128xf32>
    tpu.vector_store %arg6[%c0_8, %c0_9], %7 {strides = array<i32>} : memref<8x128xf32, #tpu.memory_space<vmem>>, vector<8x128xf32>,
    %cst_10 = arith.constant 0.000000e+00 : f32
    %9 = vector.broadcast %cst_10 : f32 to vector<8x128xf32>
    %c0_i32 = arith.constant 0 : i32
    %c8_i32 = arith.constant 8 : i32
    %10 = arith.muli %c0_i32, %c8_i32 : i32
    %11 = tpu.assume_multiple %10, 8 : i32
    %12 = arith.index_cast %11 : i32 to index
    %c0_11 = arith.constant 0 : index
    %13 = vector.load %arg5[%12, %c0_11] : memref<64x512xf32, #tpu.memory_space<vmem>>, vector<8x512xf32>
    %c0_12 = arith.constant 0 : index
    %c0_13 = arith.constant 0 : index
    %14 = vector.load %arg2[%c0_12, %c0_13] : memref<128x512xf32, #tpu.memory_space<vmem>>, vector<128x512xf32>
    %cst_14 = arith.constant dense<0.000000e+00> : vector<8x512xf32>
    %15 = tpu.matmul %9, %14, %cst_14 {dimension_numbers = #tpu.dot_dimension_numbers<[1], [0], [0], [1], [0, 0, 1, 1], [], []>} : vector<8x128xf32>, vector<128x512xf32>, vector<8x512xf32> -> vector<8x512xf32>
    %16 = arith.addf %13, %15 : vector<8x512xf32>
    %17 = vector.extract_strided_slice %16 {offsets = [0, 0], sizes = [8, 256], strides = [1, 1]} : vector<8x512xf32> to vector<8x256xf32>
    %18 = arith.negf %17 : vector<8x256xf32>
    %19 = math.exp %18 : vector<8x256xf32>
    %cst_15 = arith.constant 1.000000e+00 : f32
    %20 = vector.broadcast %cst_15 : f32 to vector<8x256xf32>
    %21 = arith.addf %20, %19 : vector<8x256xf32>
    %22 = arith.divf %20, %21 : vector<8x256xf32>
    %23 = vector.extract_strided_slice %22 {offsets = [0, 0], sizes = [8, 128], strides = [1, 1]} : vector<8x256xf32> to vector<8x128xf32>
    %24 = vector.extract_strided_slice %22 {offsets = [0, 128], sizes = [8, 128], strides = [1, 1]} : vector<8x256xf32> to vector<8x128xf32>
    %25 = vector.extract_strided_slice %16 {offsets = [0, 256], sizes = [8, 128], strides = [1, 1]} : vector<8x512xf32> to vector<8x128xf32>
    %26 = math.tanh %25 : vector<8x128xf32>
    %27 = vector.extract_strided_slice %16 {offsets = [0, 384], sizes = [8, 128], strides = [1, 1]} : vector<8x512xf32> to vector<8x128xf32>
    %28 = arith.negf %27 : vector<8x128xf32>
    %29 = math.exp %28 : vector<8x128xf32>
    %cst_16 = arith.constant 1.000000e+00 : f32
    %30 = vector.broadcast %cst_16 : f32 to vector<8x128xf32>
    %31 = arith.addf %30, %29 : vector<8x128xf32>
    %32 = arith.divf %30, %31 : vector<8x128xf32>
    %c0_17 = arith.constant 0 : index
    %c0_18 = arith.constant 0 : index
    %33 = vector.load %arg6[%c0_17, %c0_18] : memref<8x128xf32, #tpu.memory_space<vmem>>, vector<8x128xf32>
    %34 = arith.mulf %24, %33 : vector<8x128xf32>
    %35 = arith.mulf %23, %26 : vector<8x128xf32>
    %36 = arith.addf %34, %35 : vector<8x128xf32>
    %37 = math.tanh %36 : vector<8x128xf32>
    %38 = arith.mulf %32, %37 : vector<8x128xf32>
    %c0_19 = arith.constant 0 : index
    %c0_20 = arith.constant 0 : index
    %39 = vector.load %arg6[%c0_19, %c0_20] : memref<8x128xf32, #tpu.memory_space<vmem>>, vector<8x128xf32>
    tpu.vector_store %arg6[%c0_19, %c0_20], %36 {strides = array<i32>} : memref<8x128xf32, #tpu.memory_space<vmem>>, vector<8x128xf32>,
    %40 = arith.index_cast %11 : i32 to index
    %c0_21 = arith.constant 0 : index
    %41 = vector.load %arg4[%40, %c0_21] : memref<64x128xf32, #tpu.memory_space<vmem>>, vector<8x128xf32>
    tpu.vector_store %arg4[%40, %c0_21], %38 {strides = array<i32>} : memref<64x128xf32, #tpu.memory_space<vmem>>, vector<8x128xf32>,
    %c1_i32 = arith.constant 1 : i32
    %c8_i32_22 = arith.constant 8 : i32
    %42 = arith.muli %c1_i32, %c8_i32_22 : i32
    %43 = tpu.assume_multiple %42, 8 : i32
    %44 = arith.index_cast %43 : i32 to index
    %c0_23 = arith.constant 0 : index
    %45 = vector.load %arg5[%44, %c0_23] : memref<64x512xf32, #tpu.memory_space<vmem>>, vector<8x512xf32>
    %c0_24 = arith.constant 0 : index
    %c0_25 = arith.constant 0 : index
    %46 = vector.load %arg2[%c0_24, %c0_25] : memref<128x512xf32, #tpu.memory_space<vmem>>, vector<128x512xf32>
    %cst_26 = arith.constant dense<0.000000e+00> : vector<8x512xf32>
    %47 = tpu.matmul %38, %46, %cst_26 {dimension_numbers = #tpu.dot_dimension_numbers<[1], [0], [0], [1], [0, 0, 1, 1], [], []>} : vector<8x128xf32>, vector<128x512xf32>, vector<8x512xf32> -> vector<8x512xf32>
    %48 = arith.addf %45, %47 : vector<8x512xf32>
    %49 = vector.extract_strided_slice %48 {offsets = [0, 0], sizes = [8, 256], strides = [1, 1]} : vector<8x512xf32> to vector<8x256xf32>
    %50 = arith.negf %49 : vector<8x256xf32>
    %51 = math.exp %50 : vector<8x256xf32>
    %cst_27 = arith.constant 1.000000e+00 : f32
    %52 = vector.broadcast %cst_27 : f32 to vector<8x256xf32>
    %53 = arith.addf %52, %51 : vector<8x256xf32>
    %54 = arith.divf %52, %53 : vector<8x256xf32>
    %55 = vector.extract_strided_slice %54 {offsets = [0, 0], sizes = [8, 128], strides = [1, 1]} : vector<8x256xf32> to vector<8x128xf32>
    %56 = vector.extract_strided_slice %54 {offsets = [0, 128], sizes = [8, 128], strides = [1, 1]} : vector<8x256xf32> to vector<8x128xf32>
    %57 = vector.extract_strided_slice %48 {offsets = [0, 256], sizes = [8, 128], strides = [1, 1]} : vector<8x512xf32> to vector<8x128xf32>
    %58 = math.tanh %57 : vector<8x128xf32>
    %59 = vector.extract_strided_slice %48 {offsets = [0, 384], sizes = [8, 128], strides = [1, 1]} : vector<8x512xf32> to vector<8x128xf32>
    %60 = arith.negf %59 : vector<8x128xf32>
    %61 = math.exp %60 : vector<8x128xf32>
    %cst_28 = arith.constant 1.000000e+00 : f32
    %62 = vector.broadcast %cst_28 : f32 to vector<8x128xf32>
    %63 = arith.addf %62, %61 : vector<8x128xf32>
    %64 = arith.divf %62, %63 : vector<8x128xf32>
    %c0_29 = arith.constant 0 : index
    %c0_30 = arith.constant 0 : index
    %65 = vector.load %arg6[%c0_29, %c0_30] : memref<8x128xf32, #tpu.memory_space<vmem>>, vector<8x128xf32>
    %66 = arith.mulf %56, %65 : vector<8x128xf32>
    %67 = arith.mulf %55, %58 : vector<8x128xf32>
    %68 = arith.addf %66, %67 : vector<8x128xf32>
    %69 = math.tanh %68 : vector<8x128xf32>
    %70 = arith.mulf %64, %69 : vector<8x128xf32>
    %c0_31 = arith.constant 0 : index
    %c0_32 = arith.constant 0 : index
    %71 = vector.load %arg6[%c0_31, %c0_32] : memref<8x128xf32, #tpu.memory_space<vmem>>, vector<8x128xf32>
    tpu.vector_store %arg6[%c0_31, %c0_32], %68 {strides = array<i32>} : memref<8x128xf32, #tpu.memory_space<vmem>>, vector<8x128xf32>,
    %72 = arith.index_cast %43 : i32 to index
    %c0_33 = arith.constant 0 : index
    %73 = vector.load %arg4[%72, %c0_33] : memref<64x128xf32, #tpu.memory_space<vmem>>, vector<8x128xf32>
    tpu.vector_store %arg4[%72, %c0_33], %70 {strides = array<i32>} : memref<64x128xf32, #tpu.memory_space<vmem>>, vector<8x128xf32>,
    %c2_i32 = arith.constant 2 : i32
    %c8_i32_34 = arith.constant 8 : i32
    %74 = arith.muli %c2_i32, %c8_i32_34 : i32
    %75 = tpu.assume_multiple %74, 8 : i32
    %76 = arith.index_cast %75 : i32 to index
    %c0_35 = arith.constant 0 : index
    %77 = vector.load %arg5[%76, %c0_35] : memref<64x512xf32, #tpu.memory_space<vmem>>, vector<8x512xf32>
    %c0_36 = arith.constant 0 : index
    %c0_37 = arith.constant 0 : index
    %78 = vector.load %arg2[%c0_36, %c0_37] : memref<128x512xf32, #tpu.memory_space<vmem>>, vector<128x512xf32>
    %cst_38 = arith.constant dense<0.000000e+00> : vector<8x512xf32>
    %79 = tpu.matmul %70, %78, %cst_38 {dimension_numbers = #tpu.dot_dimension_numbers<[1], [0], [0], [1], [0, 0, 1, 1], [], []>} : vector<8x128xf32>, vector<128x512xf32>, vector<8x512xf32> -> vector<8x512xf32>
    %80 = arith.addf %77, %79 : vector<8x512xf32>
    %81 = vector.extract_strided_slice %80 {offsets = [0, 0], sizes = [8, 256], strides = [1, 1]} : vector<8x512xf32> to vector<8x256xf32>
    %82 = arith.negf %81 : vector<8x256xf32>
    %83 = math.exp %82 : vector<8x256xf32>
    %cst_39 = arith.constant 1.000000e+00 : f32
    %84 = vector.broadcast %cst_39 : f32 to vector<8x256xf32>
    %85 = arith.addf %84, %83 : vector<8x256xf32>
    %86 = arith.divf %84, %85 : vector<8x256xf32>
    %87 = vector.extract_strided_slice %86 {offsets = [0, 0], sizes = [8, 128], strides = [1, 1]} : vector<8x256xf32> to vector<8x128xf32>
    %88 = vector.extract_strided_slice %86 {offsets = [0, 128], sizes = [8, 128], strides = [1, 1]} : vector<8x256xf32> to vector<8x128xf32>
    %89 = vector.extract_strided_slice %80 {offsets = [0, 256], sizes = [8, 128], strides = [1, 1]} : vector<8x512xf32> to vector<8x128xf32>
    %90 = math.tanh %89 : vector<8x128xf32>
    %91 = vector.extract_strided_slice %80 {offsets = [0, 384], sizes = [8, 128], strides = [1, 1]} : vector<8x512xf32> to vector<8x128xf32>
    %92 = arith.negf %91 : vector<8x128xf32>
    %93 = math.exp %92 : vector<8x128xf32>
    %cst_40 = arith.constant 1.000000e+00 : f32
    %94 = vector.broadcast %cst_40 : f32 to vector<8x128xf32>
    %95 = arith.addf %94, %93 : vector<8x128xf32>
    %96 = arith.divf %94, %95 : vector<8x128xf32>
    %c0_41 = arith.constant 0 : index
    %c0_42 = arith.constant 0 : index
    %97 = vector.load %arg6[%c0_41, %c0_42] : memref<8x128xf32, #tpu.memory_space<vmem>>, vector<8x128xf32>
    %98 = arith.mulf %88, %97 : vector<8x128xf32>
    %99 = arith.mulf %87, %90 : vector<8x128xf32>
    %100 = arith.addf %98, %99 : vector<8x128xf32>
    %101 = math.tanh %100 : vector<8x128xf32>
    %102 = arith.mulf %96, %101 : vector<8x128xf32>
    %c0_43 = arith.constant 0 : index
    %c0_44 = arith.constant 0 : index
    %103 = vector.load %arg6[%c0_43, %c0_44] : memref<8x128xf32, #tpu.memory_space<vmem>>, vector<8x128xf32>
    tpu.vector_store %arg6[%c0_43, %c0_44], %100 {strides = array<i32>} : memref<8x128xf32, #tpu.memory_space<vmem>>, vector<8x128xf32>,
    %104 = arith.index_cast %75 : i32 to index
    %c0_45 = arith.constant 0 : index
    %105 = vector.load %arg4[%104, %c0_45] : memref<64x128xf32, #tpu.memory_space<vmem>>, vector<8x128xf32>
    tpu.vector_store %arg4[%104, %c0_45], %102 {strides = array<i32>} : memref<64x128xf32, #tpu.memory_space<vmem>>, vector<8x128xf32>,
    %c3_i32 = arith.constant 3 : i32
    %c8_i32_46 = arith.constant 8 : i32
    %106 = arith.muli %c3_i32, %c8_i32_46 : i32
    %107 = tpu.assume_multiple %106, 8 : i32
    %108 = arith.index_cast %107 : i32 to index
    %c0_47 = arith.constant 0 : index
    %109 = vector.load %arg5[%108, %c0_47] : memref<64x512xf32, #tpu.memory_space<vmem>>, vector<8x512xf32>
    %c0_48 = arith.constant 0 : index
    %c0_49 = arith.constant 0 : index
    %110 = vector.load %arg2[%c0_48, %c0_49] : memref<128x512xf32, #tpu.memory_space<vmem>>, vector<128x512xf32>
    %cst_50 = arith.constant dense<0.000000e+00> : vector<8x512xf32>
    %111 = tpu.matmul %102, %110, %cst_50 {dimension_numbers = #tpu.dot_dimension_numbers<[1], [0], [0], [1], [0, 0, 1, 1], [], []>} : vector<8x128xf32>, vector<128x512xf32>, vector<8x512xf32> -> vector<8x512xf32>
    %112 = arith.addf %109, %111 : vector<8x512xf32>
    %113 = vector.extract_strided_slice %112 {offsets = [0, 0], sizes = [8, 256], strides = [1, 1]} : vector<8x512xf32> to vector<8x256xf32>
    %114 = arith.negf %113 : vector<8x256xf32>
    %115 = math.exp %114 : vector<8x256xf32>
    %cst_51 = arith.constant 1.000000e+00 : f32
    %116 = vector.broadcast %cst_51 : f32 to vector<8x256xf32>
    %117 = arith.addf %116, %115 : vector<8x256xf32>
    %118 = arith.divf %116, %117 : vector<8x256xf32>
    %119 = vector.extract_strided_slice %118 {offsets = [0, 0], sizes = [8, 128], strides = [1, 1]} : vector<8x256xf32> to vector<8x128xf32>
    %120 = vector.extract_strided_slice %118 {offsets = [0, 128], sizes = [8, 128], strides = [1, 1]} : vector<8x256xf32> to vector<8x128xf32>
    %121 = vector.extract_strided_slice %112 {offsets = [0, 256], sizes = [8, 128], strides = [1, 1]} : vector<8x512xf32> to vector<8x128xf32>
    %122 = math.tanh %121 : vector<8x128xf32>
    %123 = vector.extract_strided_slice %112 {offsets = [0, 384], sizes = [8, 128], strides = [1, 1]} : vector<8x512xf32> to vector<8x128xf32>
    %124 = arith.negf %123 : vector<8x128xf32>
    %125 = math.exp %124 : vector<8x128xf32>
    %cst_52 = arith.constant 1.000000e+00 : f32
    %126 = vector.broadcast %cst_52 : f32 to vector<8x128xf32>
    %127 = arith.addf %126, %125 : vector<8x128xf32>
    %128 = arith.divf %126, %127 : vector<8x128xf32>
    %c0_53 = arith.constant 0 : index
    %c0_54 = arith.constant 0 : index
    %129 = vector.load %arg6[%c0_53, %c0_54] : memref<8x128xf32, #tpu.memory_space<vmem>>, vector<8x128xf32>
    %130 = arith.mulf %120, %129 : vector<8x128xf32>
    %131 = arith.mulf %119, %122 : vector<8x128xf32>
    %132 = arith.addf %130, %131 : vector<8x128xf32>
    %133 = math.tanh %132 : vector<8x128xf32>
    %134 = arith.mulf %128, %133 : vector<8x128xf32>
    %c0_55 = arith.constant 0 : index
    %c0_56 = arith.constant 0 : index
    %135 = vector.load %arg6[%c0_55, %c0_56] : memref<8x128xf32, #tpu.memory_space<vmem>>, vector<8x128xf32>
    tpu.vector_store %arg6[%c0_55, %c0_56], %132 {strides = array<i32>} : memref<8x128xf32, #tpu.memory_space<vmem>>, vector<8x128xf32>,
    %136 = arith.index_cast %107 : i32 to index
    %c0_57 = arith.constant 0 : index
    %137 = vector.load %arg4[%136, %c0_57] : memref<64x128xf32, #tpu.memory_space<vmem>>, vector<8x128xf32>
    tpu.vector_store %arg4[%136, %c0_57], %134 {strides = array<i32>} : memref<64x128xf32, #tpu.memory_space<vmem>>, vector<8x128xf32>,
    %c4_i32 = arith.constant 4 : i32
    %c8_i32_58 = arith.constant 8 : i32
    %138 = arith.muli %c4_i32, %c8_i32_58 : i32
    %139 = tpu.assume_multiple %138, 8 : i32
    %140 = arith.index_cast %139 : i32 to index
    %c0_59 = arith.constant 0 : index
    %141 = vector.load %arg5[%140, %c0_59] : memref<64x512xf32, #tpu.memory_space<vmem>>, vector<8x512xf32>
    %c0_60 = arith.constant 0 : index
    %c0_61 = arith.constant 0 : index
    %142 = vector.load %arg2[%c0_60, %c0_61] : memref<128x512xf32, #tpu.memory_space<vmem>>, vector<128x512xf32>
    %cst_62 = arith.constant dense<0.000000e+00> : vector<8x512xf32>
    %143 = tpu.matmul %134, %142, %cst_62 {dimension_numbers = #tpu.dot_dimension_numbers<[1], [0], [0], [1], [0, 0, 1, 1], [], []>} : vector<8x128xf32>, vector<128x512xf32>, vector<8x512xf32> -> vector<8x512xf32>
    %144 = arith.addf %141, %143 : vector<8x512xf32>
    %145 = vector.extract_strided_slice %144 {offsets = [0, 0], sizes = [8, 256], strides = [1, 1]} : vector<8x512xf32> to vector<8x256xf32>
    %146 = arith.negf %145 : vector<8x256xf32>
    %147 = math.exp %146 : vector<8x256xf32>
    %cst_63 = arith.constant 1.000000e+00 : f32
    %148 = vector.broadcast %cst_63 : f32 to vector<8x256xf32>
    %149 = arith.addf %148, %147 : vector<8x256xf32>
    %150 = arith.divf %148, %149 : vector<8x256xf32>
    %151 = vector.extract_strided_slice %150 {offsets = [0, 0], sizes = [8, 128], strides = [1, 1]} : vector<8x256xf32> to vector<8x128xf32>
    %152 = vector.extract_strided_slice %150 {offsets = [0, 128], sizes = [8, 128], strides = [1, 1]} : vector<8x256xf32> to vector<8x128xf32>
    %153 = vector.extract_strided_slice %144 {offsets = [0, 256], sizes = [8, 128], strides = [1, 1]} : vector<8x512xf32> to vector<8x128xf32>
    %154 = math.tanh %153 : vector<8x128xf32>
    %155 = vector.extract_strided_slice %144 {offsets = [0, 384], sizes = [8, 128], strides = [1, 1]} : vector<8x512xf32> to vector<8x128xf32>
    %156 = arith.negf %155 : vector<8x128xf32>
    %157 = math.exp %156 : vector<8x128xf32>
    %cst_64 = arith.constant 1.000000e+00 : f32
    %158 = vector.broadcast %cst_64 : f32 to vector<8x128xf32>
    %159 = arith.addf %158, %157 : vector<8x128xf32>
    %160 = arith.divf %158, %159 : vector<8x128xf32>
    %c0_65 = arith.constant 0 : index
    %c0_66 = arith.constant 0 : index
    %161 = vector.load %arg6[%c0_65, %c0_66] : memref<8x128xf32, #tpu.memory_space<vmem>>, vector<8x128xf32>
    %162 = arith.mulf %152, %161 : vector<8x128xf32>
    %163 = arith.mulf %151, %154 : vector<8x128xf32>
    %164 = arith.addf %162, %163 : vector<8x128xf32>
    %165 = math.tanh %164 : vector<8x128xf32>
    %166 = arith.mulf %160, %165 : vector<8x128xf32>
    %c0_67 = arith.constant 0 : index
    %c0_68 = arith.constant 0 : index
    %167 = vector.load %arg6[%c0_67, %c0_68] : memref<8x128xf32, #tpu.memory_space<vmem>>, vector<8x128xf32>
    tpu.vector_store %arg6[%c0_67, %c0_68], %164 {strides = array<i32>} : memref<8x128xf32, #tpu.memory_space<vmem>>, vector<8x128xf32>,
    %168 = arith.index_cast %139 : i32 to index
    %c0_69 = arith.constant 0 : index
    %169 = vector.load %arg4[%168, %c0_69] : memref<64x128xf32, #tpu.memory_space<vmem>>, vector<8x128xf32>
    tpu.vector_store %arg4[%168, %c0_69], %166 {strides = array<i32>} : memref<64x128xf32, #tpu.memory_space<vmem>>, vector<8x128xf32>,
    %c5_i32 = arith.constant 5 : i32
    %c8_i32_70 = arith.constant 8 : i32
    %170 = arith.muli %c5_i32, %c8_i32_70 : i32
    %171 = tpu.assume_multiple %170, 8 : i32
    %172 = arith.index_cast %171 : i32 to index
    %c0_71 = arith.constant 0 : index
    %173 = vector.load %arg5[%172, %c0_71] : memref<64x512xf32, #tpu.memory_space<vmem>>, vector<8x512xf32>
    %c0_72 = arith.constant 0 : index
    %c0_73 = arith.constant 0 : index
    %174 = vector.load %arg2[%c0_72, %c0_73] : memref<128x512xf32, #tpu.memory_space<vmem>>, vector<128x512xf32>
    %cst_74 = arith.constant dense<0.000000e+00> : vector<8x512xf32>
    %175 = tpu.matmul %166, %174, %cst_74 {dimension_numbers = #tpu.dot_dimension_numbers<[1], [0], [0], [1], [0, 0, 1, 1], [], []>} : vector<8x128xf32>, vector<128x512xf32>, vector<8x512xf32> -> vector<8x512xf32>
    %176 = arith.addf %173, %175 : vector<8x512xf32>
    %177 = vector.extract_strided_slice %176 {offsets = [0, 0], sizes = [8, 256], strides = [1, 1]} : vector<8x512xf32> to vector<8x256xf32>
    %178 = arith.negf %177 : vector<8x256xf32>
    %179 = math.exp %178 : vector<8x256xf32>
    %cst_75 = arith.constant 1.000000e+00 : f32
    %180 = vector.broadcast %cst_75 : f32 to vector<8x256xf32>
    %181 = arith.addf %180, %179 : vector<8x256xf32>
    %182 = arith.divf %180, %181 : vector<8x256xf32>
    %183 = vector.extract_strided_slice %182 {offsets = [0, 0], sizes = [8, 128], strides = [1, 1]} : vector<8x256xf32> to vector<8x128xf32>
    %184 = vector.extract_strided_slice %182 {offsets = [0, 128], sizes = [8, 128], strides = [1, 1]} : vector<8x256xf32> to vector<8x128xf32>
    %185 = vector.extract_strided_slice %176 {offsets = [0, 256], sizes = [8, 128], strides = [1, 1]} : vector<8x512xf32> to vector<8x128xf32>
    %186 = math.tanh %185 : vector<8x128xf32>
    %187 = vector.extract_strided_slice %176 {offsets = [0, 384], sizes = [8, 128], strides = [1, 1]} : vector<8x512xf32> to vector<8x128xf32>
    %188 = arith.negf %187 : vector<8x128xf32>
    %189 = math.exp %188 : vector<8x128xf32>
    %cst_76 = arith.constant 1.000000e+00 : f32
    %190 = vector.broadcast %cst_76 : f32 to vector<8x128xf32>
    %191 = arith.addf %190, %189 : vector<8x128xf32>
    %192 = arith.divf %190, %191 : vector<8x128xf32>
    %c0_77 = arith.constant 0 : index
    %c0_78 = arith.constant 0 : index
    %193 = vector.load %arg6[%c0_77, %c0_78] : memref<8x128xf32, #tpu.memory_space<vmem>>, vector<8x128xf32>
    %194 = arith.mulf %184, %193 : vector<8x128xf32>
    %195 = arith.mulf %183, %186 : vector<8x128xf32>
    %196 = arith.addf %194, %195 : vector<8x128xf32>
    %197 = math.tanh %196 : vector<8x128xf32>
    %198 = arith.mulf %192, %197 : vector<8x128xf32>
    %c0_79 = arith.constant 0 : index
    %c0_80 = arith.constant 0 : index
    %199 = vector.load %arg6[%c0_79, %c0_80] : memref<8x128xf32, #tpu.memory_space<vmem>>, vector<8x128xf32>
    tpu.vector_store %arg6[%c0_79, %c0_80], %196 {strides = array<i32>} : memref<8x128xf32, #tpu.memory_space<vmem>>, vector<8x128xf32>,
    %200 = arith.index_cast %171 : i32 to index
    %c0_81 = arith.constant 0 : index
    %201 = vector.load %arg4[%200, %c0_81] : memref<64x128xf32, #tpu.memory_space<vmem>>, vector<8x128xf32>
    tpu.vector_store %arg4[%200, %c0_81], %198 {strides = array<i32>} : memref<64x128xf32, #tpu.memory_space<vmem>>, vector<8x128xf32>,
    %c6_i32 = arith.constant 6 : i32
    %c8_i32_82 = arith.constant 8 : i32
    %202 = arith.muli %c6_i32, %c8_i32_82 : i32
    %203 = tpu.assume_multiple %202, 8 : i32
    %204 = arith.index_cast %203 : i32 to index
    %c0_83 = arith.constant 0 : index
    %205 = vector.load %arg5[%204, %c0_83] : memref<64x512xf32, #tpu.memory_space<vmem>>, vector<8x512xf32>
    %c0_84 = arith.constant 0 : index
    %c0_85 = arith.constant 0 : index
    %206 = vector.load %arg2[%c0_84, %c0_85] : memref<128x512xf32, #tpu.memory_space<vmem>>, vector<128x512xf32>
    %cst_86 = arith.constant dense<0.000000e+00> : vector<8x512xf32>
    %207 = tpu.matmul %198, %206, %cst_86 {dimension_numbers = #tpu.dot_dimension_numbers<[1], [0], [0], [1], [0, 0, 1, 1], [], []>} : vector<8x128xf32>, vector<128x512xf32>, vector<8x512xf32> -> vector<8x512xf32>
    %208 = arith.addf %205, %207 : vector<8x512xf32>
    %209 = vector.extract_strided_slice %208 {offsets = [0, 0], sizes = [8, 256], strides = [1, 1]} : vector<8x512xf32> to vector<8x256xf32>
    %210 = arith.negf %209 : vector<8x256xf32>
    %211 = math.exp %210 : vector<8x256xf32>
    %cst_87 = arith.constant 1.000000e+00 : f32
    %212 = vector.broadcast %cst_87 : f32 to vector<8x256xf32>
    %213 = arith.addf %212, %211 : vector<8x256xf32>
    %214 = arith.divf %212, %213 : vector<8x256xf32>
    %215 = vector.extract_strided_slice %214 {offsets = [0, 0], sizes = [8, 128], strides = [1, 1]} : vector<8x256xf32> to vector<8x128xf32>
    %216 = vector.extract_strided_slice %214 {offsets = [0, 128], sizes = [8, 128], strides = [1, 1]} : vector<8x256xf32> to vector<8x128xf32>
    %217 = vector.extract_strided_slice %208 {offsets = [0, 256], sizes = [8, 128], strides = [1, 1]} : vector<8x512xf32> to vector<8x128xf32>
    %218 = math.tanh %217 : vector<8x128xf32>
    %219 = vector.extract_strided_slice %208 {offsets = [0, 384], sizes = [8, 128], strides = [1, 1]} : vector<8x512xf32> to vector<8x128xf32>
    %220 = arith.negf %219 : vector<8x128xf32>
    %221 = math.exp %220 : vector<8x128xf32>
    %cst_88 = arith.constant 1.000000e+00 : f32
    %222 = vector.broadcast %cst_88 : f32 to vector<8x128xf32>
    %223 = arith.addf %222, %221 : vector<8x128xf32>
    %224 = arith.divf %222, %223 : vector<8x128xf32>
    %c0_89 = arith.constant 0 : index
    %c0_90 = arith.constant 0 : index
    %225 = vector.load %arg6[%c0_89, %c0_90] : memref<8x128xf32, #tpu.memory_space<vmem>>, vector<8x128xf32>
    %226 = arith.mulf %216, %225 : vector<8x128xf32>
    %227 = arith.mulf %215, %218 : vector<8x128xf32>
    %228 = arith.addf %226, %227 : vector<8x128xf32>
    %229 = math.tanh %228 : vector<8x128xf32>
    %230 = arith.mulf %224, %229 : vector<8x128xf32>
    %c0_91 = arith.constant 0 : index
    %c0_92 = arith.constant 0 : index
    %231 = vector.load %arg6[%c0_91, %c0_92] : memref<8x128xf32, #tpu.memory_space<vmem>>, vector<8x128xf32>
    tpu.vector_store %arg6[%c0_91, %c0_92], %228 {strides = array<i32>} : memref<8x128xf32, #tpu.memory_space<vmem>>, vector<8x128xf32>,
    %232 = arith.index_cast %203 : i32 to index
    %c0_93 = arith.constant 0 : index
    %233 = vector.load %arg4[%232, %c0_93] : memref<64x128xf32, #tpu.memory_space<vmem>>, vector<8x128xf32>
    tpu.vector_store %arg4[%232, %c0_93], %230 {strides = array<i32>} : memref<64x128xf32, #tpu.memory_space<vmem>>, vector<8x128xf32>,
    %c7_i32 = arith.constant 7 : i32
    %c8_i32_94 = arith.constant 8 : i32
    %234 = arith.muli %c7_i32, %c8_i32_94 : i32
    %235 = tpu.assume_multiple %234, 8 : i32
    %236 = arith.index_cast %235 : i32 to index
    %c0_95 = arith.constant 0 : index
    %237 = vector.load %arg5[%236, %c0_95] : memref<64x512xf32, #tpu.memory_space<vmem>>, vector<8x512xf32>
    %c0_96 = arith.constant 0 : index
    %c0_97 = arith.constant 0 : index
    %238 = vector.load %arg2[%c0_96, %c0_97] : memref<128x512xf32, #tpu.memory_space<vmem>>, vector<128x512xf32>
    %cst_98 = arith.constant dense<0.000000e+00> : vector<8x512xf32>
    %239 = tpu.matmul %230, %238, %cst_98 {dimension_numbers = #tpu.dot_dimension_numbers<[1], [0], [0], [1], [0, 0, 1, 1], [], []>} : vector<8x128xf32>, vector<128x512xf32>, vector<8x512xf32> -> vector<8x512xf32>
    %240 = arith.addf %237, %239 : vector<8x512xf32>
    %241 = vector.extract_strided_slice %240 {offsets = [0, 0], sizes = [8, 256], strides = [1, 1]} : vector<8x512xf32> to vector<8x256xf32>
    %242 = arith.negf %241 : vector<8x256xf32>
    %243 = math.exp %242 : vector<8x256xf32>
    %cst_99 = arith.constant 1.000000e+00 : f32
    %244 = vector.broadcast %cst_99 : f32 to vector<8x256xf32>
    %245 = arith.addf %244, %243 : vector<8x256xf32>
    %246 = arith.divf %244, %245 : vector<8x256xf32>
    %247 = vector.extract_strided_slice %246 {offsets = [0, 0], sizes = [8, 128], strides = [1, 1]} : vector<8x256xf32> to vector<8x128xf32>
    %248 = vector.extract_strided_slice %246 {offsets = [0, 128], sizes = [8, 128], strides = [1, 1]} : vector<8x256xf32> to vector<8x128xf32>
    %249 = vector.extract_strided_slice %240 {offsets = [0, 256], sizes = [8, 128], strides = [1, 1]} : vector<8x512xf32> to vector<8x128xf32>
    %250 = math.tanh %249 : vector<8x128xf32>
    %251 = vector.extract_strided_slice %240 {offsets = [0, 384], sizes = [8, 128], strides = [1, 1]} : vector<8x512xf32> to vector<8x128xf32>
    %252 = arith.negf %251 : vector<8x128xf32>
    %253 = math.exp %252 : vector<8x128xf32>
    %cst_100 = arith.constant 1.000000e+00 : f32
    %254 = vector.broadcast %cst_100 : f32 to vector<8x128xf32>
    %255 = arith.addf %254, %253 : vector<8x128xf32>
    %256 = arith.divf %254, %255 : vector<8x128xf32>
    %c0_101 = arith.constant 0 : index
    %c0_102 = arith.constant 0 : index
    %257 = vector.load %arg6[%c0_101, %c0_102] : memref<8x128xf32, #tpu.memory_space<vmem>>, vector<8x128xf32>
    %258 = arith.mulf %248, %257 : vector<8x128xf32>
    %259 = arith.mulf %247, %250 : vector<8x128xf32>
    %260 = arith.addf %258, %259 : vector<8x128xf32>
    %261 = math.tanh %260 : vector<8x128xf32>
    %262 = arith.mulf %256, %261 : vector<8x128xf32>
    %c0_103 = arith.constant 0 : index
    %c0_104 = arith.constant 0 : index
    %263 = vector.load %arg6[%c0_103, %c0_104] : memref<8x128xf32, #tpu.memory_space<vmem>>, vector<8x128xf32>
    tpu.vector_store %arg6[%c0_103, %c0_104], %260 {strides = array<i32>} : memref<8x128xf32, #tpu.memory_space<vmem>>, vector<8x128xf32>,
    %264 = arith.index_cast %235 : i32 to index
    %c0_105 = arith.constant 0 : index
    %265 = vector.load %arg4[%264, %c0_105] : memref<64x128xf32, #tpu.memory_space<vmem>>, vector<8x128xf32>
    tpu.vector_store %arg4[%264, %c0_105], %262 {strides = array<i32>} : memref<64x128xf32, #tpu.memory_space<vmem>>, vector<8x128xf32>,
    %c8_i32_106 = arith.constant 8 : i32
    return
  }
}

</mosaic_0001>

<bundles_post_ra>
// kernel: decoder_rnn_forward.3
= control target key start
LH: loop header
LB: loop body
LE: loop exit
PB: predicated region body
PF: predicated region fallthrough
CT: control target
= control target key end

     0   :  { %s735_s12 = smov 0   ;;  %s737_s13 = smov 0   ;;  %s849_s0 = inlined_call_operand.vmem [shape: f32[64,128], index: 0, kind: input, shape index: {}]   ;;  %s850_s1 = inlined_call_operand.vmem [shape: bf16[128,256], index: 1, kind: input, shape index: {}]   ;;  %s851_s2 = inlined_call_operand.vmem [shape: f32[1,256], index: 2, kind: input, shape index: {}]   ;;  %s852_s3 = inlined_call_operand.vmem [shape: f32[8,2048], index: 3, kind: output, shape index: {}]  }
   0x1   :  { %s739_s14 = smov 0   ;;  %s741_s15 = smov 0  }
   0x2   :  { %s743_s16 = smov 0   ;;  %s745_s17 = smov 0  }
   0x3   :  { %s747_s18 = smov 0  }
   0x4 LB: > { %s22_s19 = sadd.s32 1, %s703_s16  ;;  %s25_s20 = sadd.s32 1, %s707_s17  ;;  %s711_s18 = sphi %s747_s18, %s13_s18   ;;  %s707_s17 = sphi %s745_s17, %s858_s17   ;;  %s703_s16 = sphi %s743_s16, %s857_s16   ;;  %s699_s15 = sphi %s741_s15, %s856_s15   ;;  %s695_s14 = sphi %s739_s14, %s855_s14   ;;  %s691_s13 = sphi %s737_s13, %s854_s13   ;;  %s687_s12 = sphi %s735_s12, %s853_s12  }
   0x5   : > { %p23_p0 = scmp.ge.s32.totalorder %s22_s19, 2  ;;  %s58_s21 = sadd.s32 1, %s691_s13 }
   0x6   : > { %p65_p1 = scmp.ne.s32.totalorder %s691_s13, %s687_s12  ;;  %p66_p2 = scmp.eq.s32.totalorder %s711_s18, 0 }
   0x7   : > { %s860_s19 = smov (%p23_p0, %s22_s19), 0  ;;  %s862_s20 = smov (!%p23_p0, %s25_s20), %s707_s17 }
   0x8   : > { %s55_s22 = ssub.s32 %s703_s16, %s860_s19  ;;  %p67_p3 = por %p66_p2, %p65_p1 }
   0x9   : > { %p27_p4 = scmp.ge.s32.totalorder %s862_s20, 8  ;;  %p56_p5 = scmp.eq.s32.totalorder %s55_s22, 0 }
   0xa   : > { %p543_p6 = scmp.ge.s32.totalorder %s711_s18, 16 }
   0xb   : > { %s864_s20 = smov (%p27_p4, %s862_s20), 0 }
   0xc   : > { %s784_s23 = scalar_select %p56_p5, %s691_s13, %s58_s21  }
   0xd   : > { %147 = sbr.rel (%p543_p6) target bundleno = 32 (0x20), region = 16 }
  0x12   : > { %157 = sbr.rel (!%p67_p3) target bundleno = 32 (0x20), region = 24  ;;  %s159_s24 = sand.u32 (%p67_p3), 1, %s691_s13  }
  0x13   : > { %s545_s25 = sshll.u32 (%p67_p3), %s703_s16, 2  ;;  %s544_s26 = sshll.u32 (%p67_p3), %s159_s24, 6 }
  0x14   : > { %s792_s29 = scalar_lea.vmem (%p67_p3), %s850_s1, %s545_s25  ;;  %s161_s30 = scalar_lea.vmem (%p67_p3), [#allocation2], %s544_s26 }
  0x15   : > { %v180_v0 = vld [vmem:[%s792_s29] sm:$0xf] (%p67_p3)  ;;  %v182_v1 = vld [vmem:[%s792_s29 + $0x8] sm:$0xf] (%p67_p3)  ;;  %v184_v2 = vld [vmem:[%s792_s29 + $0x10] sm:$0xf] (%p67_p3) }
  0x16   : > { %181 = vst [vmem:[%s161_s30] sm:$0xf] (%p67_p3), %v180_v0  ;;  %183 = vst [vmem:[%s161_s30 + $0x4] sm:$0xf] (%p67_p3), %v182_v1  ;;  %v186_v3 = vld [vmem:[%s792_s29 + $0x18] sm:$0xf] (%p67_p3) }
  0x17   : > { %v188_v4 = vld [vmem:[%s792_s29 + $0x20] sm:$0xf]  ;;  %185 = vst [vmem:[%s161_s30 + $0x8] sm:$0xf] %v184_v2  ;;  %187 = vst [vmem:[%s161_s30 + $0xc] sm:$0xf] %v186_v3 }
  0x18   : > { %189 = vst [vmem:[%s161_s30 + $0x10] sm:$0xf] %v188_v4  ;;  %v190_v5 = vld [vmem:[%s792_s29 + $0x28] sm:$0xf]  ;;  %v192_v6 = vld [vmem:[%s792_s29 + $0x30] sm:$0xf] }
  0x19   : > { %v194_v7 = vld [vmem:[%s792_s29 + $0x38] sm:$0xf]  ;;  %191 = vst [vmem:[%s161_s30 + $0x14] sm:$0xf] %v190_v5  ;;  %193 = vst [vmem:[%s161_s30 + $0x18] sm:$0xf] %v192_v6 }
  0x1a   : > { %195 = vst [vmem:[%s161_s30 + $0x1c] sm:$0xf] %v194_v7  ;;  %v196_v8 = vld [vmem:[%s792_s29 + $0x40] sm:$0xf]  ;;  %v198_v9 = vld [vmem:[%s792_s29 + $0x48] sm:$0xf] }
  0x1b   : > { %v200_v10 = vld [vmem:[%s792_s29 + $0x50] sm:$0xf]  ;;  %197 = vst [vmem:[%s161_s30 + $0x20] sm:$0xf] %v196_v8  ;;  %199 = vst [vmem:[%s161_s30 + $0x24] sm:$0xf] %v198_v9 }
  0x1c   : > { %201 = vst [vmem:[%s161_s30 + $0x28] sm:$0xf] %v200_v10  ;;  %v202_v11 = vld [vmem:[%s792_s29 + $0x58] sm:$0xf]  ;;  %v204_v12 = vld [vmem:[%s792_s29 + $0x60] sm:$0xf] }
  0x1d   : > { %v206_v13 = vld [vmem:[%s792_s29 + $0x68] sm:$0xf]  ;;  %203 = vst [vmem:[%s161_s30 + $0x2c] sm:$0xf] %v202_v11  ;;  %205 = vst [vmem:[%s161_s30 + $0x30] sm:$0xf] %v204_v12 }
  0x1e   : > { %207 = vst [vmem:[%s161_s30 + $0x34] sm:$0xf] %v206_v13  ;;  %v208_v14 = vld [vmem:[%s792_s29 + $0x70] sm:$0xf]  ;;  %v210_v15 = vld [vmem:[%s792_s29 + $0x78] sm:$0xf] }
  0x1f   : > { %209 = vst [vmem:[%s161_s30 + $0x38] sm:$0xf] %v208_v14  ;;  %211 = vst [vmem:[%s161_s30 + $0x3c] sm:$0xf] %v210_v15 }
  0x20 PF: > { %p546_p7 = scmp.ge.s32.totalorder %s711_s18, 1  ;;  %p272_p8 = scmp.lt.s32.totalorder %s711_s18, 17 }
  0x22   : > { %p273_p9 = pnand %p546_p7, %p272_p8 }
  0x23   : > { %s279_s4 = sand.u32 (!%p273_p9), 1, %s687_s12   ;;  %p310_p10 = scmp.lt.s32.totalorder (!%p273_p9), %s699_s15, 7 }
  0x24   : > { %276 = sbr.rel (%p273_p9) target bundleno = 273 (0x111), region = 69  ;;  %s547_s5 = sshll.u32 (!%p273_p9), %s279_s4, 6 }
  0x25   : > { %s281_s6 = scalar_lea.vmem (!%p273_p9), [#allocation2], %s547_s5  ;;  %s549_s12 = sshll.u32 (!%p273_p9), %s699_s15, 1 }
  0x26   : > { %s318_s21 = sadd.s32 (!%p273_p9), %s695_s14, %s549_s12  ;;  %p314_p11 = scmp.lt.s32.totalorder (!%p273_p9), %s695_s14, 1 }
  0x27   : > { %p319_p12 = scmp.lt.s32.totalorder (!%p273_p9), %s318_s21, 15 }
  0x29   : > { %v713_v16 = vmov 0.0   ;;  %vm714_vm0 = vmmov 0   ;;  %v649_v17 = vld [vmem:[%s281_s6 + $0x38] sm:$0xff]   ;;  %v650_v18 = vld [vmem:[%s281_s6 + $0x30] sm:$0xff]   ;;  %v651_v19 = vld [vmem:[%s281_s6 + $0x28] sm:$0xff]   ;;  %s311_s7 = scalar_select %p310_p10, %s699_s15, 7 }
  0x2a   : > { %571 = vmatprep.subr.bf16.mxu0 %v713_v16  ;;  %587 = vmatprep.mubr.msk.bf16.mxu0 %vm714_vm0, %v713_v16  ;;  %v652_v20 = vld [vmem:[%s281_s6 + $0x20] sm:$0xff]   ;;  %v653_v21 = vld [vmem:[%s281_s6 + $0x18] sm:$0xff]   ;;  %v654_v22 = vld [vmem:[%s281_s6 + $0x10] sm:$0xff]   ;;  %s866_s14 = smov (!%p314_p11, %s695_s14), 1  ;;  %s868_s21 = smov (!%p319_p12, %s318_s21), 15 }
  0x2b   : > { %572 = vmatpush3.bf16.msra.mxu0 %v649_v17  ;;  %s548_s8 = sshll.u32 %s311_s7, 3  ;;  %v655_v23 = vld [vmem:[%s281_s6 + $0x8] sm:$0xff]   ;;  %v656_v24 = vld [vmem:[%s281_s6] sm:$0xff]   ;;  %s316_s25 = scalar_lea.vmem %s851_s2, %s866_s14 }
  0x2c   : > { %573 = vmatprep.subr.bf16.mxu0 %v713_v16  ;;  %s313_s11 = scalar_lea.vmem %s849_s0, %s548_s8  ;;  %s550_s26 = sshll.u32 %s868_s21, 3  ;;  %v551_v27 = vld [vmem:[%s316_s25] ss:$0 sm:$0xff] }
  0x2d   : > { %v326_v25 = vld [vmem:[%s313_s11] sm:$0xff]  ;;  %s322_s29 = scalar_lea.vmem %s852_s3, %s550_s26 }
  0x2e   : > { %v327_v26 = vpack.c.bf16 %v326_v25, %v326_v25 }
  0x2f   : > { %574 = vmatpush3.bf16.msra.mxu0 %v650_v18 }
  0x30   : > { %575 = vmatprep.subr.bf16.mxu0 %v713_v16 }
  0x33   : > { %576 = vmatpush3.bf16.msra.mxu0 %v651_v19 }
  0x34   : > { %577 = vmatprep.subr.bf16.mxu0 %v713_v16 }
  0x37   : > { %578 = vmatpush3.bf16.msra.mxu0 %v652_v20 }
  0x38   : > { %579 = vmatprep.subr.bf16.mxu0 %v713_v16 }
  0x3b   : > { %580 = vmatpush3.bf16.msra.mxu0 %v653_v21 }
  0x3c   : > { %581 = vmatprep.subr.bf16.mxu0 %v713_v16 }
  0x3f   : > { %582 = vmatpush3.bf16.msra.mxu0 %v654_v22 }
  0x40   : > { %583 = vmatprep.subr.bf16.mxu0 %v713_v16 }
  0x43   : > { %584 = vmatpush3.bf16.msra.mxu0 %v655_v23 }
  0x44   : > { %585 = vmatprep.subr.bf16.mxu0 %v713_v16 }
  0x47   : > { %586 = vmatpush3.bf16.msra.mxu0 %v656_v24 }
  0x4a   : > { %588 = vmatmul.mubr.bf16.vlgmr.msra.gmra.mxu0 %v327_v26 }
 0x10a   : > { %v433_v28 = vpop.f32.mrf.mxu0 }
 0x10b   : > { %v434_v29 = vadd.f32 %v551_v27, %v433_v28 }
 0x10c   : > { %v589_v30 = vpop.f32.mrf.mxu0 }
 0x10d   : > { %439 = vst [vmem:[%s322_s29] sm:$0xff] %v434_v29 }
 0x10e   : > { %v436_v31 = vpop.f32.mrf.mxu0 }
 0x110   : > { %v590_v32 = vpop.f32.mrf.mxu0 }
 0x111 PF: > { %s13_s18 = sadd.s32 1, %s711_s18   ;;  %s853_s12 = smov %s691_s13 }
 0x112   : > { %p10_p13 = scmp.ge.s32.totalorder %s13_s18, 18   ;;  %s854_s13 = smov %s784_s23 }
 0x113   : > { %s855_s14 = smov %s703_s16  ;;  %s856_s15 = smov %s707_s17 }
 0x114   : > { %s857_s16 = smov %s860_s19  ;;  %s858_s17 = smov %s864_s20 }
 0x115   :  { %12 = sbr.rel (!%p10_p13) target bundleno = 4 (0x4), region = 114 }

// kernel: decoder_rnn_forward.2
= control target key start
LH: loop header
LB: loop body
LE: loop exit
PB: predicated region body
PF: predicated region fallthrough
CT: control target
= control target key end

     0   :  { %v2662_v1 = vmov 0   ;;  %s4270_s1 = inlined_call_operand.vmem [shape: bf16[128,512], index: 1, kind: input, shape index: {}]   ;;  %s4271_s0 = inlined_call_operand.vmem [shape: bf16[64,128], index: 0, kind: input, shape index: {}]   ;;  %s4272_s2 = inlined_call_operand.vmem [shape: f32[128,512], index: 2, kind: input, shape index: {}]   ;;  %s4273_s3 = inlined_call_operand.vmem [shape: f32[1,512], index: 3, kind: input, shape index: {}]   ;;  %s4274_s4 = inlined_call_operand.vmem [shape: f32[64,128], index: 4, kind: output, shape index: {}]  }
   0x1   :  { %v2482_v0 = vld [vmem:[%s4270_s1 + $0xe4] ss:$16 sps:$4 sm:$0xff]   ;;  %296 = vmatprep.mubr.bf16.mxu0 %v2662_v1  ;;  %369 = vmatprep.mubr.bf16.mxu1 %v2662_v1  ;;  %v2484_v2 = vld [vmem:[%s4270_s1 + $0xec] ss:$16 sps:$4 sm:$0xff]   ;;  %v2486_v3 = vld [vmem:[%s4270_s1 + $0xe0] ss:$16 sps:$4 sm:$0xff]  }
   0x2   :  { %264 = vmatprep.subr.bf16.mxu0 %v2482_v0  ;;  %v2487_v4 = vld [vmem:[%s4270_s1 + $0xe8] ss:$16 sps:$4 sm:$0xff]   ;;  %337 = vmatprep.subr.bf16.mxu1 %v2484_v2  ;;  %v2488_v5 = vld [vmem:[%s4270_s1 + $0xc4] ss:$16 sps:$4 sm:$0xff]   ;;  %v2490_v6 = vld [vmem:[%s4270_s1 + $0xcc] ss:$16 sps:$4 sm:$0xff]  }
   0x3   :  { %265 = vmatpush1.bf16.msra.mxu0 %v2486_v3  ;;  %338 = vmatpush1.bf16.msra.mxu1 %v2487_v4  ;;  %v2492_v7 = vld [vmem:[%s4270_s1 + $0xc0] ss:$16 sps:$4 sm:$0xff]   ;;  %v2493_v8 = vld [vmem:[%s4270_s1 + $0xc8] ss:$16 sps:$4 sm:$0xff]   ;;  %v2494_v9 = vld [vmem:[%s4270_s1 + $0xa4] ss:$16 sps:$4 sm:$0xff]  }
   0x4   :  { %266 = vmatprep.subr.bf16.mxu0 %v2488_v5  ;;  %339 = vmatprep.subr.bf16.mxu1 %v2490_v6  ;;  %v2496_v10 = vld [vmem:[%s4270_s1 + $0xac] ss:$16 sps:$4 sm:$0xff]   ;;  %v2498_v11 = vld [vmem:[%s4270_s1 + $0xa0] ss:$16 sps:$4 sm:$0xff]   ;;  %v2499_v12 = vld [vmem:[%s4270_s1 + $0xa8] ss:$16 sps:$4 sm:$0xff]  }
   0x5   :  { %v2500_v13 = vld [vmem:[%s4270_s1 + $0x84] ss:$16 sps:$4 sm:$0xff]   ;;  %v2502_v14 = vld [vmem:[%s4270_s1 + $0x8c] ss:$16 sps:$4 sm:$0xff]   ;;  %v2504_v15 = vld [vmem:[%s4270_s1 + $0x80] ss:$16 sps:$4 sm:$0xff]  }
   0x6   :  { %v2505_v16 = vld [vmem:[%s4270_s1 + $0x88] ss:$16 sps:$4 sm:$0xff]   ;;  %v2506_v17 = vld [vmem:[%s4270_s1 + $0x64] ss:$16 sps:$4 sm:$0xff]   ;;  %v2508_v18 = vld [vmem:[%s4270_s1 + $0x6c] ss:$16 sps:$4 sm:$0xff]  }
   0x7   :  { %267 = vmatpush1.bf16.msra.mxu0 %v2492_v7  ;;  %340 = vmatpush1.bf16.msra.mxu1 %v2493_v8  ;;  %v2510_v19 = vld [vmem:[%s4270_s1 + $0x60] ss:$16 sps:$4 sm:$0xff]   ;;  %v2511_v20 = vld [vmem:[%s4270_s1 + $0x68] ss:$16 sps:$4 sm:$0xff]   ;;  %v2512_v21 = vld [vmem:[%s4270_s1 + $0x44] ss:$16 sps:$4 sm:$0xff]  }
   0x8   :  { %268 = vmatprep.subr.bf16.mxu0 %v2494_v9  ;;  %341 = vmatprep.subr.bf16.mxu1 %v2496_v10  ;;  %v2514_v22 = vld [vmem:[%s4270_s1 + $0x4c] ss:$16 sps:$4 sm:$0xff]   ;;  %v2516_v23 = vld [vmem:[%s4270_s1 + $0x40] ss:$16 sps:$4 sm:$0xff]   ;;  %v2517_v24 = vld [vmem:[%s4270_s1 + $0x48] ss:$16 sps:$4 sm:$0xff]  }
   0x9   :  { %v2518_v25 = vld [vmem:[%s4270_s1 + $0x24] ss:$16 sps:$4 sm:$0xff]   ;;  %v2520_v26 = vld [vmem:[%s4270_s1 + $0x2c] ss:$16 sps:$4 sm:$0xff]   ;;  %v2522_v27 = vld [vmem:[%s4270_s1 + $0x20] ss:$16 sps:$4 sm:$0xff]  }
   0xa   :  { %v2523_v28 = vld [vmem:[%s4270_s1 + $0x28] ss:$16 sps:$4 sm:$0xff]   ;;  %v2524_v29 = vld [vmem:[%s4270_s1 + $0x4] ss:$16 sps:$4 sm:$0xff]   ;;  %v2526_v30 = vld [vmem:[%s4270_s1 + $0xc] ss:$16 sps:$4 sm:$0xff]  }
   0xb   :  { %269 = vmatpush1.bf16.msra.mxu0 %v2498_v11  ;;  %342 = vmatpush1.bf16.msra.mxu1 %v2499_v12  ;;  %v2528_v31 = vld [vmem:[%s4270_s1] ss:$16 sps:$4 sm:$0xff]   ;;  %v2529_v32 = vld [vmem:[%s4270_s1 + $0x8] ss:$16 sps:$4 sm:$0xff]  }
   0xc   :  { %270 = vmatprep.subr.bf16.mxu0 %v2500_v13  ;;  %343 = vmatprep.subr.bf16.mxu1 %v2502_v14  ;;  %v2790_v33 = vld [vmem:[%s4272_s2 + $0x1e8] sm:$0xff]  ;;  %v2795_v34 = vld [vmem:[%s4272_s2 + $0x1f8] sm:$0xff]  ;;  %v2530_v35 = vld [vmem:[%s4271_s0] sm:$0xff]  }
   0xd   :  { %v2805_v36 = vld [vmem:[%s4272_s2 + $0x1e0] sm:$0xff]  ;;  %v2810_v37 = vld [vmem:[%s4272_s2 + $0x1f0] sm:$0xff]  ;;  %v2815_v38 = vld [vmem:[%s4272_s2 + $0x1c8] sm:$0xff] }
   0xe   :  { %v2820_v39 = vld [vmem:[%s4272_s2 + $0x1d8] sm:$0xff]  ;;  %v2825_v40 = vld [vmem:[%s4272_s2 + $0x1c0] sm:$0xff]  ;;  %v2830_v41 = vld [vmem:[%s4272_s2 + $0x1d0] sm:$0xff] }
   0xf   :  { %271 = vmatpush1.bf16.msra.mxu0 %v2504_v15  ;;  %344 = vmatpush1.bf16.msra.mxu1 %v2505_v16  ;;  %v2837_v42 = vld [vmem:[%s4272_s2 + $0x1a8] sm:$0xff]  ;;  %v2842_v43 = vld [vmem:[%s4272_s2 + $0x1b8] sm:$0xff]  ;;  %v2849_v44 = vld [vmem:[%s4272_s2 + $0x1a0] sm:$0xff] }
  0x10   :  { %272 = vmatprep.subr.bf16.mxu0 %v2506_v17  ;;  %345 = vmatprep.subr.bf16.mxu1 %v2508_v18  ;;  %v2854_v45 = vld [vmem:[%s4272_s2 + $0x1b0] sm:$0xff]  ;;  %v2861_v46 = vld [vmem:[%s4272_s2 + $0x188] sm:$0xff]  ;;  %v2866_v47 = vld [vmem:[%s4272_s2 + $0x198] sm:$0xff] }
  0x11   :  { %v2873_v48 = vld [vmem:[%s4272_s2 + $0x180] sm:$0xff]  ;;  %v2878_v49 = vld [vmem:[%s4272_s2 + $0x190] sm:$0xff]  ;;  %v2531_v50 = vld [vmem:[%s4271_s0 + $0x8] sm:$0xff]  }
  0x12   :  { %v2892_v51 = vld [vmem:[%s4272_s2 + $0x168] sm:$0xff]  ;;  %v2897_v52 = vld [vmem:[%s4272_s2 + $0x178] sm:$0xff]  ;;  %v2904_v53 = vld [vmem:[%s4272_s2 + $0x160] sm:$0xff] }
  0x13   :  { %273 = vmatpush1.bf16.msra.mxu0 %v2510_v19  ;;  %346 = vmatpush1.bf16.msra.mxu1 %v2511_v20  ;;  %v2909_v54 = vld [vmem:[%s4272_s2 + $0x170] sm:$0xff]  ;;  %v2914_v55 = vld [vmem:[%s4272_s2 + $0x148] sm:$0xff]  ;;  %v2919_v56 = vld [vmem:[%s4272_s2 + $0x158] sm:$0xff] }
  0x14   :  { %274 = vmatprep.subr.bf16.mxu0 %v2512_v21  ;;  %347 = vmatprep.subr.bf16.mxu1 %v2514_v22  ;;  %v2926_v57 = vld [vmem:[%s4272_s2 + $0x140] sm:$0xff]  ;;  %v2931_v58 = vld [vmem:[%s4272_s2 + $0x150] sm:$0xff]  ;;  %v2938_v59 = vld [vmem:[%s4272_s2 + $0x128] sm:$0xff] }
  0x15   :  { %v2943_v60 = vld [vmem:[%s4272_s2 + $0x138] sm:$0xff]  ;;  %v2950_v61 = vld [vmem:[%s4272_s2 + $0x120] sm:$0xff]  ;;  %v2955_v62 = vld [vmem:[%s4272_s2 + $0x130] sm:$0xff] }
  0x16   :  { %v2962_v63 = vld [vmem:[%s4272_s2 + $0x108] sm:$0xff]  ;;  %v2967_v0 = vld [vmem:[%s4272_s2 + $0x118] sm:$0xff]  ;;  %v2976_v2 = vld [vmem:[%s4272_s2 + $0x100] sm:$0xff] }
  0x17   :  { %275 = vmatpush1.bf16.msra.mxu0 %v2516_v23  ;;  %348 = vmatpush1.bf16.msra.mxu1 %v2517_v24  ;;  %v2981_v3 = vld [vmem:[%s4272_s2 + $0x110] sm:$0xff]  ;;  %v2993_v5 = vld [vmem:[%s4272_s2 + $0xe8] sm:$0xff]  ;;  %v2998_v6 = vld [vmem:[%s4272_s2 + $0xf8] sm:$0xff] }
  0x18   :  { %276 = vmatprep.subr.bf16.mxu0 %v2518_v25  ;;  %349 = vmatprep.subr.bf16.mxu1 %v2520_v26  ;;  %v2532_v4 = vld [vmem:[%s4271_s0 + $0x10] sm:$0xff]   ;;  %v3005_v7 = vld [vmem:[%s4272_s2 + $0xe0] sm:$0xff]  ;;  %v3015_v9 = vld [vmem:[%s4272_s2 + $0xc8] sm:$0xff] }
  0x19   :  { %v3010_v8 = vld [vmem:[%s4272_s2 + $0xf0] sm:$0xff]  ;;  %v3020_v10 = vld [vmem:[%s4272_s2 + $0xd8] sm:$0xff]  ;;  %v3027_v11 = vld [vmem:[%s4272_s2 + $0xc0] sm:$0xff] }
  0x1a   :  { %v3032_v12 = vld [vmem:[%s4272_s2 + $0xd0] sm:$0xff]  ;;  %v3039_v13 = vld [vmem:[%s4272_s2 + $0xa8] sm:$0xff]  ;;  %v3044_v14 = vld [vmem:[%s4272_s2 + $0xb8] sm:$0xff] }
  0x1b   :  { %277 = vmatpush1.bf16.msra.mxu0 %v2522_v27  ;;  %350 = vmatpush1.bf16.msra.mxu1 %v2523_v28  ;;  %v3051_v15 = vld [vmem:[%s4272_s2 + $0xa0] sm:$0xff]  ;;  %v3056_v16 = vld [vmem:[%s4272_s2 + $0xb0] sm:$0xff]  ;;  %v3063_v17 = vld [vmem:[%s4272_s2 + $0x88] sm:$0xff] }
  0x1c   :  { %278 = vmatprep.subr.bf16.mxu0 %v2524_v29  ;;  %351 = vmatprep.subr.bf16.mxu1 %v2526_v30  ;;  %4340 = vst [vmem:[#allocation4_spill] sm:$0xff] %v3063_v17  ;;  %v3068_v18 = vld [vmem:[%s4272_s2 + $0x98] sm:$0xff]  ;;  %v3077_v19 = vld [vmem:[%s4272_s2 + $0x80] sm:$0xff]  ;;  %v3082_v20 = vld [vmem:[%s4272_s2 + $0x90] sm:$0xff] }
  0x1d   :  { %4341 = vst [vmem:[#allocation5_spill] sm:$0xff] %v3068_v18  ;;  %4342 = vst [vmem:[#allocation6_spill] sm:$0xff] %v3077_v19  ;;  %v2533_v21 = vld [vmem:[%s4271_s0 + $0x18] sm:$0xff]   ;;  %v3094_v22 = vld [vmem:[%s4272_s2 + $0x68] sm:$0xff] }
  0x1e   :  { %4343 = vst [vmem:[#allocation7_spill] sm:$0xff] %v3082_v20  ;;  %4344 = vst [vmem:[#allocation8_spill] sm:$0xff] %v3094_v22  ;;  %v3099_v23 = vld [vmem:[%s4272_s2 + $0x78] sm:$0xff]  ;;  %v3106_v24 = vld [vmem:[%s4272_s2 + $0x60] sm:$0xff] }
  0x1f   :  { %279 = vmatpush1.bf16.msra.mxu0 %v2528_v31  ;;  %352 = vmatpush1.bf16.msra.mxu1 %v2529_v32  ;;  %4345 = vst [vmem:[#allocation9_spill] sm:$0xff] %v3099_v23  ;;  %4346 = vst [vmem:[#allocation10_spill] sm:$0xff] %v3106_v24  ;;  %v3116_v25 = vld [vmem:[%s4272_s2 + $0x48] sm:$0xff]  ;;  %v3121_v26 = vld [vmem:[%s4272_s2 + $0x58] sm:$0xff] }
  0x20   :  { %514 = vmatprep.subr.mxu0 %v2790_v33  ;;  %585 = vmatprep.subr.mxu1 %v2795_v34  ;;  %4348 = vst [vmem:[#allocation12_spill] sm:$0xff] %v3116_v25  ;;  %4349 = vst [vmem:[#allocation13_spill] sm:$0xff] %v3121_v26  ;;  %v3128_v27 = vld [vmem:[%s4272_s2 + $0x40] sm:$0xff]  ;;  %v3133_v28 = vld [vmem:[%s4272_s2 + $0x50] sm:$0xff] }
  0x21   :  { %4350 = vst [vmem:[#allocation14_spill] sm:$0xff] %v3128_v27  ;;  %4351 = vst [vmem:[#allocation15_spill] sm:$0xff] %v3133_v28  ;;  %v3140_v29 = vld [vmem:[%s4272_s2 + $0x28] sm:$0xff]  ;;  %v3145_v30 = vld [vmem:[%s4272_s2 + $0x38] sm:$0xff] }
  0x22   :  { %297 = vmatmul.mubr.bf16.vlgmr.msra.gmra.mxu0 %v2530_v35  ;;  %370 = vmatmul.mubr.bf16.vlgmr.msra.gmra.mxu1 %v2530_v35  ;;  %4352 = vst [vmem:[#allocation16_spill] sm:$0xff] %v3140_v29  ;;  %4353 = vst [vmem:[#allocation17_spill] sm:$0xff] %v3145_v30  ;;  %v3152_v31 = vld [vmem:[%s4272_s2 + $0x20] sm:$0xff]  ;;  %v3157_v32 = vld [vmem:[%s4272_s2 + $0x30] sm:$0xff] }
  0x23   :  { %515 = vmatpush1.msra.mxu0 %v2805_v36  ;;  %586 = vmatpush1.msra.mxu1 %v2810_v37  ;;  %4354 = vst [vmem:[#allocation18_spill] sm:$0xff] %v3152_v31  ;;  %4355 = vst [vmem:[#allocation19_spill] sm:$0xff] %v3157_v32  ;;  %v3164_v35 = vld [vmem:[%s4272_s2 + $0x8] sm:$0xff] }
  0x24   :  { %516 = vmatprep.subr.mxu0 %v2815_v38  ;;  %587 = vmatprep.subr.mxu1 %v2820_v39  ;;  %4356 = vst [vmem:[#allocation20_spill] sm:$0xff] %v3164_v35 }
  0x25   :  { %517 = vmatpush1.msra.mxu0 %v2825_v40  ;;  %588 = vmatpush1.msra.mxu1 %v2830_v41 }
  0x26   :  { %518 = vmatprep.subr.mxu0 %v2837_v42  ;;  %589 = vmatprep.subr.mxu1 %v2842_v43 }
  0x27   :  { %519 = vmatpush1.msra.mxu0 %v2849_v44  ;;  %590 = vmatpush1.msra.mxu1 %v2854_v45 }
  0x28   :  { %520 = vmatprep.subr.mxu0 %v2861_v46  ;;  %591 = vmatprep.subr.mxu1 %v2866_v47 }
  0x29   :  { %306 = vmatprep.mubr.bf16.mxu0 %v2662_v1  ;;  %379 = vmatprep.mubr.bf16.mxu1 %v2662_v1 }
  0x2a   :  { %521 = vmatpush1.msra.mxu0 %v2873_v48  ;;  %592 = vmatpush1.msra.mxu1 %v2878_v49 }
  0x2b   :  { %307 = vmatmul.mubr.bf16.gmra.mxu0 %v2531_v50  ;;  %380 = vmatmul.mubr.bf16.gmra.mxu1 %v2531_v50  ;;  %v3169_v50 = vld [vmem:[%s4272_s2 + $0x18] sm:$0xff] }
  0x2c   :  { %522 = vmatprep.subr.mxu0 %v2892_v51  ;;  %593 = vmatprep.subr.mxu1 %v2897_v52  ;;  %4357 = vst [vmem:[#allocation21_spill] sm:$0xff] %v3169_v50 }
  0x2d   :  { %523 = vmatpush1.msra.mxu0 %v2904_v53  ;;  %594 = vmatpush1.msra.mxu1 %v2909_v54 }
  0x2e   :  { %524 = vmatprep.subr.mxu0 %v2914_v55  ;;  %595 = vmatprep.subr.mxu1 %v2919_v56 }
  0x2f   :  { %525 = vmatpush1.msra.mxu0 %v2926_v57  ;;  %596 = vmatpush1.msra.mxu1 %v2931_v58 }
  0x30   :  { %526 = vmatprep.subr.mxu0 %v2938_v59  ;;  %597 = vmatprep.subr.mxu1 %v2943_v60 }
  0x31   :  { %527 = vmatpush1.msra.mxu0 %v2950_v61  ;;  %598 = vmatpush1.msra.mxu1 %v2955_v62 }
  0x32   :  { %528 = vmatprep.subr.mxu0 %v2962_v63  ;;  %599 = vmatprep.subr.mxu1 %v2967_v0 }
  0x33   :  { %316 = vmatprep.mubr.bf16.mxu0 %v2662_v1  ;;  %389 = vmatprep.mubr.bf16.mxu1 %v2662_v1 }
  0x34   :  { %529 = vmatpush1.msra.mxu0 %v2976_v2  ;;  %600 = vmatpush1.msra.mxu1 %v2981_v3 }
  0x35   :  { %317 = vmatmul.mubr.bf16.gmra.mxu0 %v2532_v4  ;;  %390 = vmatmul.mubr.bf16.gmra.mxu1 %v2532_v4  ;;  %v3176_v4 = vld [vmem:[%s4272_s2] sm:$0xff] }
  0x36   :  { %530 = vmatprep.subr.mxu0 %v2993_v5  ;;  %601 = vmatprep.subr.mxu1 %v2998_v6  ;;  %4358 = vst [vmem:[#allocation22_spill] sm:$0xff] %v3176_v4 }
  0x37   :  { %531 = vmatpush1.msra.mxu0 %v3005_v7  ;;  %602 = vmatpush1.msra.mxu1 %v3010_v8 }
  0x38   :  { %532 = vmatprep.subr.mxu0 %v3015_v9  ;;  %603 = vmatprep.subr.mxu1 %v3020_v10 }
  0x39   :  { %533 = vmatpush1.msra.mxu0 %v3027_v11  ;;  %604 = vmatpush1.msra.mxu1 %v3032_v12 }
  0x3a   :  { %534 = vmatprep.subr.mxu0 %v3039_v13  ;;  %605 = vmatprep.subr.mxu1 %v3044_v14 }
  0x3b   :  { %535 = vmatpush1.msra.mxu0 %v3051_v15  ;;  %606 = vmatpush1.msra.mxu1 %v3056_v16 }
  0x3c   :  { %536 = vmatprep.subr.mxu0 %v3063_v17  ;;  %607 = vmatprep.subr.mxu1 %v3068_v18 }
  0x3d   :  { %326 = vmatprep.mubr.bf16.mxu0 %v2662_v1  ;;  %399 = vmatprep.mubr.bf16.mxu1 %v2662_v1  ;;  %v3111_v1 = vld [vmem:[%s4272_s2 + $0x70] sm:$0xff] }
  0x3e   :  { %537 = vmatpush1.msra.mxu0 %v3077_v19  ;;  %608 = vmatpush1.msra.mxu1 %v3082_v20  ;;  %4347 = vst [vmem:[#allocation11_spill] sm:$0xff] %v3111_v1 }
  0x3f   :  { %327 = vmatmul.mubr.bf16.gmra.mxu0 %v2533_v21  ;;  %400 = vmatmul.mubr.bf16.gmra.mxu1 %v2533_v21  ;;  %v3183_v21 = vld [vmem:[%s4272_s2 + $0x10] sm:$0xff] }
  0x40   :  { %538 = vmatprep.subr.mxu0 %v3094_v22  ;;  %609 = vmatprep.subr.mxu1 %v3099_v23  ;;  %4359 = vst [vmem:[#allocation23_spill] sm:$0xff] %v3183_v21 }
  0x41   :  { %539 = vmatpush1.msra.mxu0 %v3106_v24  ;;  %610 = vmatpush1.msra.mxu1 %v3111_v1 }
  0x42   :  { %540 = vmatprep.subr.mxu0 %v3116_v25  ;;  %611 = vmatprep.subr.mxu1 %v3121_v26 }
  0x43   :  { %541 = vmatpush1.msra.mxu0 %v3128_v27  ;;  %612 = vmatpush1.msra.mxu1 %v3133_v28 }
  0x44   :  { %542 = vmatprep.subr.mxu0 %v3140_v29  ;;  %613 = vmatprep.subr.mxu1 %v3145_v30  ;;  %v4277_v30 = vmov 0.0  }
  0x45   :  { %543 = vmatpush1.msra.mxu0 %v3152_v31  ;;  %614 = vmatpush1.msra.mxu1 %v3157_v32 }
  0x46   :  { %544 = vmatprep.subr.mxu0 %v3164_v35  ;;  %615 = vmatprep.subr.mxu1 %v3169_v50 }
  0x47   :  { %545 = vmatpush1.msra.mxu0 %v3176_v4  ;;  %578 = vmatprep.mubr.f32.mxu0 %v4277_v30 }
  0x48   :  { %616 = vmatpush1.msra.mxu1 %v3183_v21  ;;  %649 = vmatprep.mubr.f32.mxu1 %v4277_v30 }
  0x49   :  { %579 = vmatmul.mubr.f32.vlgmr.msra.gmra.mxu0 %v4277_v30  ;;  %650 = vmatmul.mubr.f32.vlgmr.msra.gmra.mxu1 %v4277_v30  ;;  %v4360_v30 = vld [vmem:[#allocation17_spill] sm:$0xff] }
  0x4a   :  { %758 = vmatprep.subr.mxu0 %v2790_v33  ;;  %829 = vmatprep.subr.mxu1 %v2795_v34 }
  0x4b   :  { %759 = vmatpush1.msra.mxu0 %v2805_v36  ;;  %830 = vmatpush1.msra.mxu1 %v2810_v37 }
  0x4c   :  { %760 = vmatprep.subr.mxu0 %v2815_v38  ;;  %831 = vmatprep.subr.mxu1 %v2820_v39 }
  0x4d   :  { %761 = vmatpush1.msra.mxu0 %v2825_v40  ;;  %832 = vmatpush1.msra.mxu1 %v2830_v41 }
  0x4e   :  { %762 = vmatprep.subr.mxu0 %v2837_v42  ;;  %833 = vmatprep.subr.mxu1 %v2842_v43 }
  0x4f   :  { %763 = vmatpush1.msra.mxu0 %v2849_v44  ;;  %834 = vmatpush1.msra.mxu1 %v2854_v45 }
  0x50   :  { %764 = vmatprep.subr.mxu0 %v2861_v46  ;;  %835 = vmatprep.subr.mxu1 %v2866_v47 }
  0x51   :  { %765 = vmatpush1.msra.mxu0 %v2873_v48  ;;  %836 = vmatpush1.msra.mxu1 %v2878_v49 }
  0x52   :  { %766 = vmatprep.subr.mxu0 %v2892_v51  ;;  %837 = vmatprep.subr.mxu1 %v2897_v52 }
  0x53   :  { %767 = vmatpush1.msra.mxu0 %v2904_v53  ;;  %838 = vmatpush1.msra.mxu1 %v2909_v54 }
  0x54   :  { %768 = vmatprep.subr.mxu0 %v2914_v55  ;;  %839 = vmatprep.subr.mxu1 %v2919_v56 }
  0x55   :  { %769 = vmatpush1.msra.mxu0 %v2926_v57  ;;  %840 = vmatpush1.msra.mxu1 %v2931_v58 }
  0x56   :  { %770 = vmatprep.subr.mxu0 %v2938_v59  ;;  %841 = vmatprep.subr.mxu1 %v2943_v60 }
  0x57   :  { %771 = vmatpush1.msra.mxu0 %v2950_v61  ;;  %842 = vmatpush1.msra.mxu1 %v2955_v62 }
  0x58   :  { %772 = vmatprep.subr.mxu0 %v2962_v63  ;;  %843 = vmatprep.subr.mxu1 %v2967_v0 }
  0x59   :  { %773 = vmatpush1.msra.mxu0 %v2976_v2  ;;  %844 = vmatpush1.msra.mxu1 %v2981_v3 }
  0x5a   :  { %774 = vmatprep.subr.mxu0 %v2993_v5  ;;  %845 = vmatprep.subr.mxu1 %v2998_v6 }
  0x5b   :  { %775 = vmatpush1.msra.mxu0 %v3005_v7  ;;  %846 = vmatpush1.msra.mxu1 %v3010_v8 }
  0x5c   :  { %776 = vmatprep.subr.mxu0 %v3015_v9  ;;  %847 = vmatprep.subr.mxu1 %v3020_v10 }
  0x5d   :  { %777 = vmatpush1.msra.mxu0 %v3027_v11  ;;  %848 = vmatpush1.msra.mxu1 %v3032_v12 }
  0x5e   :  { %778 = vmatprep.subr.mxu0 %v3039_v13  ;;  %849 = vmatprep.subr.mxu1 %v3044_v14 }
  0x5f   :  { %779 = vmatpush1.msra.mxu0 %v3051_v15  ;;  %850 = vmatpush1.msra.mxu1 %v3056_v16 }
  0x60   :  { %780 = vmatprep.subr.mxu0 %v3063_v17  ;;  %851 = vmatprep.subr.mxu1 %v3068_v18 }
  0x61   :  { %781 = vmatpush1.msra.mxu0 %v3077_v19  ;;  %852 = vmatpush1.msra.mxu1 %v3082_v20 }
  0x62   :  { %782 = vmatprep.subr.mxu0 %v3094_v22  ;;  %853 = vmatprep.subr.mxu1 %v3099_v23 }
  0x63   :  { %783 = vmatpush1.msra.mxu0 %v3106_v24  ;;  %854 = vmatpush1.msra.mxu1 %v3111_v1 }
  0x64   :  { %784 = vmatprep.subr.mxu0 %v3116_v25  ;;  %855 = vmatprep.subr.mxu1 %v3121_v26  ;;  %v4361_v25 = vmov 0.0  }
  0x65   :  { %785 = vmatpush1.msra.mxu0 %v3128_v27  ;;  %856 = vmatpush1.msra.mxu1 %v3133_v28 }
  0x66   :  { %786 = vmatprep.subr.mxu0 %v3140_v29  ;;  %857 = vmatprep.subr.mxu1 %v4360_v30  ;;  %v60_v30 = vlaneseq }
  0x67   :  { %787 = vmatpush1.msra.mxu0 %v3152_v31  ;;  %858 = vmatpush1.msra.mxu1 %v3157_v32 }
  0x68   :  { %788 = vmatprep.subr.mxu0 %v3164_v35  ;;  %859 = vmatprep.subr.mxu1 %v3169_v50  ;;  %v61_v31 = vshrl.u32 %v60_v30, 7  ;;  %v58_v50 = vld [vmem:[%s4273_s3] sm:$0xf] }
  0x69   :  { %789 = vmatpush1.msra.mxu0 %v3176_v4  ;;  %822 = vmatprep.mubr.f32.mxu0 %v4361_v25 }
  0x6a   :  { %860 = vmatpush1.msra.mxu1 %v3183_v21  ;;  %893 = vmatprep.mubr.f32.mxu1 %v4361_v25  ;;  %v70_v29 = vsub.s32 2, %v61_v31  ;;  %v62_v32 = vsub.s32 0, %v61_v31  ;;  %v74_v28 = vsub.s32 3, %v61_v31  ;;  %v66_v25 = vsub.s32 1, %v61_v31 }
  0x6b   :  { %1003 = vmatprep.subr.mxu0 %v2790_v33  ;;  %1074 = vmatprep.subr.mxu1 %v2795_v34 }
  0x6c   :  { %v3268_v21 = vrot.slane %v58_v50, %v70_v29  ;;  %v63_v34 = vrot.slane %v58_v50, %v62_v32  ;;  %v3274_v30 = vrot.slane %v58_v50, %v74_v28  ;;  %v67_v24 = vrot.slane %v58_v50, %v66_v25 }
  0xe2   :  { %v3264_v4 = vpop.f32.mrf.mxu0  ;;  %v3266_v35 = vpop.f32.mrf.mxu1 }
  0xe4   :  { %v3270_v27 = vpop.f32.mrf.mxu0  ;;  %v3272_v33 = vpop.f32.mrf.mxu1 }
  0xe6   :  { %v302_v26 = vpop.f32.mrf.mxu0  ;;  %v375_v1 = vpop.f32.mrf.mxu1 }
  0xe7   :  { %v3276_v23 = vadd.f32 %v302_v26, %v63_v34  ;;  %v3279_v22 = vadd.f32 %v375_v1, %v3268_v21 }
  0xe8   :  { %v304_v20 = vpop.f32.mrf.mxu0  ;;  %v377_v19 = vpop.f32.mrf.mxu1 }
  0xe9   :  { %4362 = vst [vmem:[#allocation24_spill] sm:$0xff] %v3276_v23  ;;  %4363 = vst [vmem:[#allocation25_spill] sm:$0xff] %v3279_v22  ;;  %v3281_v29 = vadd.f32 %v304_v20, %v67_v24  ;;  %v3284_v31 = vadd.f32 %v377_v19, %v3274_v30 }
  0xeb   :  { %4364 = vst [vmem:[#allocation26_spill] sm:$0xff] %v3281_v29  ;;  %4365 = vst [vmem:[#allocation27_spill] sm:$0xff] %v3284_v31  ;;  %v308_v18 = vpop.f32.mrf.mxu0  ;;  %v381_v17 = vpop.f32.mrf.mxu1 }
  0xec   :  { %v3286_v32 = vadd.f32 %v308_v18, %v63_v34  ;;  %v3289_v28 = vadd.f32 %v381_v17, %v3268_v21 }
  0xed   :  { %v310_v25 = vpop.f32.mrf.mxu0  ;;  %v383_v26 = vpop.f32.mrf.mxu1 }
  0xee   :  { %4366 = vst [vmem:[#allocation28_spill] sm:$0xff] %v3286_v32  ;;  %4367 = vst [vmem:[#allocation29_spill] sm:$0xff] %v3289_v28  ;;  %v3291_v50 = vadd.f32 %v310_v25, %v67_v24  ;;  %v3294_v1 = vadd.f32 %v383_v26, %v3274_v30 }
  0xef   :  { %v312_v22 = vpop.f32.mrf.mxu0  ;;  %v385_v20 = vpop.f32.mrf.mxu1 }
  0xf0   :  { %4368 = vst [vmem:[#allocation30_spill] sm:$0xff] %v3291_v50  ;;  %4369 = vst [vmem:[#allocation31_spill] sm:$0xff] %v3294_v1  ;;  %v3296_v29 = vadd.f32 %v312_v22, %v63_v34  ;;  %v3299_v19 = vadd.f32 %v385_v20, %v3268_v21 }
  0xf1   :  { %v314_v31 = vpop.f32.mrf.mxu0  ;;  %v387_v18 = vpop.f32.mrf.mxu1 }
  0xf2   :  { %4370 = vst [vmem:[#allocation32_spill] sm:$0xff] %v3296_v29  ;;  %4371 = vst [vmem:[#allocation33_spill] sm:$0xff] %v3299_v19  ;;  %v3301_v32 = vadd.f32 %v314_v31, %v67_v24  ;;  %v3304_v17 = vadd.f32 %v387_v18, %v3274_v30 }
  0xf4   :  { %4372 = vst [vmem:[#allocation34_spill] sm:$0xff] %v3301_v32  ;;  %4373 = vst [vmem:[#allocation35_spill] sm:$0xff] %v3304_v17 }
  0xf5   :  { %v318_v28 = vpop.f32.mrf.mxu0  ;;  %v391_v25 = vpop.f32.mrf.mxu1 }
  0xf6   :  { %v3306_v50 = vadd.f32 %v318_v28, %v63_v34  ;;  %v3309_v26 = vadd.f32 %v391_v25, %v3268_v21 }
  0xf7   :  { %v320_v1 = vpop.f32.mrf.mxu0  ;;  %v393_v22 = vpop.f32.mrf.mxu1 }
  0xf8   :  { %4374 = vst [vmem:[#allocation36_spill] sm:$0xff] %v3306_v50  ;;  %4375 = vst [vmem:[#allocation37_spill] sm:$0xff] %v3309_v26  ;;  %v3311_v29 = vadd.f32 %v320_v1, %v67_v24  ;;  %v3314_v20 = vadd.f32 %v393_v22, %v3274_v30 }
  0xf9   :  { %v322_v19 = vpop.f32.mrf.mxu0  ;;  %v395_v31 = vpop.f32.mrf.mxu1 }
  0xfa   :  { %4376 = vst [vmem:[#allocation38_spill] sm:$0xff] %v3311_v29  ;;  %4377 = vst [vmem:[#allocation39_spill] sm:$0xff] %v3314_v20  ;;  %v3316_v32 = vadd.f32 %v322_v19, %v63_v34  ;;  %v3319_v18 = vadd.f32 %v395_v31, %v3268_v21 }
  0xfb   :  { %v324_v17 = vpop.f32.mrf.mxu0  ;;  %v397_v28 = vpop.f32.mrf.mxu1 }
  0xfc   :  { %4378 = vst [vmem:[#allocation40_spill] sm:$0xff] %v3316_v32  ;;  %4379 = vst [vmem:[#allocation41_spill] sm:$0xff] %v3319_v18  ;;  %v3321_v50 = vadd.f32 %v324_v17, %v67_v24  ;;  %v3324_v25 = vadd.f32 %v397_v28, %v3274_v30 }
  0xfe   :  { %4380 = vst [vmem:[#allocation42_spill] sm:$0xff] %v3321_v50  ;;  %4381 = vst [vmem:[#allocation43_spill] sm:$0xff] %v3324_v25 }
  0xff   :  { %v328_v26 = vpop.f32.mrf.mxu0  ;;  %v401_v1 = vpop.f32.mrf.mxu1 }
 0x100   :  { %v3326_v29 = vadd.f32 %v328_v26, %v63_v34  ;;  %v3329_v22 = vadd.f32 %v401_v1, %v3268_v21 }
 0x101   :  { %v330_v20 = vpop.f32.mrf.mxu0  ;;  %v403_v19 = vpop.f32.mrf.mxu1 }
 0x102   :  { %4382 = vst [vmem:[#allocation44_spill] sm:$0xff] %v3326_v29  ;;  %4383 = vst [vmem:[#allocation45_spill] sm:$0xff] %v3329_v22  ;;  %v3331_v32 = vadd.f32 %v330_v20, %v67_v24  ;;  %v3334_v31 = vadd.f32 %v403_v19, %v3274_v30  ;;  %v299_v20 = vadd.f32 %v3264_v4, %v63_v34 }
 0x103   :  { %v332_v18 = vpop.f32.mrf.mxu0  ;;  %v405_v17 = vpop.f32.mrf.mxu1  ;;  %v301_v19 = vadd.f32 %v3270_v27, %v67_v24 }
 0x104   :  { %4384 = vst [vmem:[#allocation46_spill] sm:$0xff] %v3331_v32  ;;  %4385 = vst [vmem:[#allocation47_spill] sm:$0xff] %v3334_v31  ;;  %v3336_v50 = vadd.f32 %v332_v18, %v63_v34  ;;  %v3339_v28 = vadd.f32 %v405_v17, %v3268_v21 }
 0x105   :  { %v334_v25 = vpop.f32.mrf.mxu0  ;;  %v407_v26 = vpop.f32.mrf.mxu1 }
 0x106   :  { %4386 = vst [vmem:[#allocation48_spill] sm:$0xff] %v3336_v50  ;;  %4387 = vst [vmem:[#allocation49_spill] sm:$0xff] %v3339_v28  ;;  %v3341_v29 = vadd.f32 %v334_v25, %v67_v24  ;;  %v3344_v1 = vadd.f32 %v407_v26, %v3274_v30  ;;  %v374_v25 = vadd.f32 %v3272_v33, %v3274_v30 }
 0x107   :  { %v372_v26 = vadd.f32 %v3266_v35, %v3268_v21 }
 0x108   :  { %4388 = vst [vmem:[#allocation50_spill] sm:$0xff] %v3341_v29  ;;  %4389 = vst [vmem:[#allocation51_spill] sm:$0xff] %v3344_v1 }
 0x109   :  { %v580_v22 = vpop.f32.mrf.mxu0  ;;  %v651_v50 = vpop.f32.mrf.mxu1 }
 0x10a   :  { %v656_v31 = vadd.f32 %v580_v22, %v299_v20  ;;  %v658_v1 = vadd.f32 %v651_v50, %v372_v26 }
 0x10b   :  { %v582_v32 = vpop.f32.mrf.mxu0  ;;  %v653_v28 = vpop.f32.mrf.mxu1 }
 0x10c   :  { %v2449_v23 = vmul.f32 -1.442695, %v656_v31  ;;  %v657_v18 = vadd.f32 %v582_v32, %v301_v19  ;;  %v659_v29 = vadd.f32 %v653_v28, %v374_v25 }
 0x10e   :  { %2534 = vpow2.f32 %v2449_v23  ;;  %v2450_v17 = vmul.f32 -1.442695, %v657_v18  ;;  %v2451_v4 = vmul.f32 -1.442695, %v659_v29 }
 0x110   :  { %2536 = vpow2.f32 %v2450_v17 }
 0x111   :  { %2538 = vpow2.f32 %v2451_v4 }
 0x11b   :  { %v2535_v34 = vpop.eup %2534 }
 0x11c   :  { %v666_v24 = vadd.f32 1.0, %v2535_v34 }
 0x11d   :  { %v2537_v27 = vpop.eup %2536 }
 0x11e   :  { %2540 = vrcp.f32 %v666_v24  ;;  %v667_v32 = vadd.f32 1.0, %v2537_v27  ;;  %v2539_v23 = vpop.eup %2538  ;;  %v3438_v27 = vld [vmem:[%s4272_s2 + $0x1e8] sm:$0xff] }
 0x11f   :  { %2542 = vtanh.f32 %v658_v1  ;;  %v676_v19 = vadd.f32 1.0, %v2539_v23  ;;  %v3450_v23 = vld [vmem:[%s4272_s2 + $0x1e0] sm:$0xff] }
 0x120   :  { %2544 = vrcp.f32 %v667_v32  ;;  %v3443_v32 = vld [vmem:[%s4272_s2 + $0x1f8] sm:$0xff] }
 0x121   :  { %2546 = vrcp.f32 %v676_v19  ;;  %v3474_v19 = vld [vmem:[%s4272_s2 + $0x1c0] sm:$0xff] }
 0x12b   :  { %v2541_v22 = vpop.eup %2540 }
 0x12c   :  { %v2543_v31 = vpop.eup %2542 }
 0x12d   :  { %v2545_v20 = vpop.eup %2544  ;;  %v681_v30 = vmul.f32 %v2543_v31, %v2541_v22  ;;  %v3455_v22 = vld [vmem:[%s4272_s2 + $0x1f0] sm:$0xff]  ;;  %v3462_v31 = vld [vmem:[%s4272_s2 + $0x1c8] sm:$0xff] }
 0x12e   :  { %v680_v33 = vmul.f32 0.0, %v2545_v20  ;;  %v2547_v35 = vpop.eup %2546  ;;  %v3467_v20 = vld [vmem:[%s4272_s2 + $0x1d8] sm:$0xff] }
 0x130   :  { %v3352_v28 = vadd.f32 %v681_v30, %v680_v33  ;;  %v3479_v33 = vld [vmem:[%s4272_s2 + $0x1d0] sm:$0xff]  ;;  %v3486_v30 = vld [vmem:[%s4272_s2 + $0x1a8] sm:$0xff] }
 0x132   :  { %2548 = vtanh.f32 %v3352_v28 }
 0x13f   :  { %v2549_v21 = vpop.eup %2548 }
 0x140   :  { %v684_v29 = vmul.f32 %v2549_v21, %v2547_v35  ;;  %v3498_v35 = vld [vmem:[%s4272_s2 + $0x1a0] sm:$0xff]  ;;  %v3503_v21 = vld [vmem:[%s4272_s2 + $0x1b0] sm:$0xff] }
 0x142   :  { %686 = vst [vmem:[%s4274_s4] sm:$0xff] %v684_v29  ;;  %823 = vmatmul.mubr.f32.vlgmr.msra.gmra.mxu0 %v684_v29  ;;  %894 = vmatmul.mubr.f32.vlgmr.msra.gmra.mxu1 %v684_v29  ;;  %v3510_v29 = vld [vmem:[%s4272_s2 + $0x188] sm:$0xff] }
 0x143   :  { %1004 = vmatpush1.msra.mxu0 %v2805_v36  ;;  %1075 = vmatpush1.msra.mxu1 %v2810_v37  ;;  %v4390_v36 = vld [vmem:[#allocation4_spill] sm:$0xff]  ;;  %v4391_v37 = vld [vmem:[#allocation5_spill] sm:$0xff] }
 0x144   :  { %1005 = vmatprep.subr.mxu0 %v2815_v38  ;;  %1076 = vmatprep.subr.mxu1 %v2820_v39  ;;  %v4392_v38 = vld [vmem:[#allocation6_spill] sm:$0xff]  ;;  %v4393_v39 = vld [vmem:[#allocation7_spill] sm:$0xff]  ;;  %4415 = vst [vmem:[#allocation4_spill] sm:$0xff] %v3438_v27  ;;  %4416 = vst [vmem:[#allocation5_spill] sm:$0xff] %v3443_v32 }
 0x145   :  { %1006 = vmatpush1.msra.mxu0 %v2825_v40  ;;  %1077 = vmatpush1.msra.mxu1 %v2830_v41  ;;  %v4394_v40 = vld [vmem:[#allocation8_spill] sm:$0xff]  ;;  %v4395_v41 = vld [vmem:[#allocation9_spill] sm:$0xff] }
 0x146   :  { %1007 = vmatprep.subr.mxu0 %v2837_v42  ;;  %1078 = vmatprep.subr.mxu1 %v2842_v43  ;;  %v4396_v42 = vld [vmem:[#allocation10_spill] sm:$0xff]  ;;  %v4397_v43 = vld [vmem:[#allocation11_spill] sm:$0xff] }
 0x147   :  { %1008 = vmatpush1.msra.mxu0 %v2849_v44  ;;  %1079 = vmatpush1.msra.mxu1 %v2854_v45  ;;  %v4398_v44 = vld [vmem:[#allocation12_spill] sm:$0xff]  ;;  %v4399_v45 = vld [vmem:[#allocation13_spill] sm:$0xff] }
 0x148   :  { %1009 = vmatprep.subr.mxu0 %v2861_v46  ;;  %1080 = vmatprep.subr.mxu1 %v2866_v47  ;;  %v4400_v46 = vld [vmem:[#allocation14_spill] sm:$0xff]  ;;  %v4401_v47 = vld [vmem:[#allocation15_spill] sm:$0xff] }
 0x149   :  { %1010 = vmatpush1.msra.mxu0 %v2873_v48  ;;  %1081 = vmatpush1.msra.mxu1 %v2878_v49  ;;  %v4402_v48 = vld [vmem:[#allocation16_spill] sm:$0xff]  ;;  %v4403_v49 = vld [vmem:[#allocation17_spill] sm:$0xff] }
 0x14a   :  { %1011 = vmatprep.subr.mxu0 %v2892_v51  ;;  %1082 = vmatprep.subr.mxu1 %v2897_v52  ;;  %v4404_v51 = vld [vmem:[#allocation18_spill] sm:$0xff]  ;;  %v4405_v52 = vld [vmem:[#allocation19_spill] sm:$0xff] }
 0x14b   :  { %1012 = vmatpush1.msra.mxu0 %v2904_v53  ;;  %1083 = vmatpush1.msra.mxu1 %v2909_v54  ;;  %v4406_v53 = vld [vmem:[#allocation20_spill] sm:$0xff]  ;;  %v4407_v54 = vld [vmem:[#allocation21_spill] sm:$0xff] }
 0x14c   :  { %1013 = vmatprep.subr.mxu0 %v2914_v55  ;;  %1084 = vmatprep.subr.mxu1 %v2919_v56  ;;  %v4408_v55 = vld [vmem:[#allocation22_spill] sm:$0xff]  ;;  %v4409_v56 = vmov 0.0  }
 0x14d   :  { %1014 = vmatpush1.msra.mxu0 %v2926_v57  ;;  %1085 = vmatpush1.msra.mxu1 %v2931_v58  ;;  %v4410_v57 = vld [vmem:[#allocation23_spill] sm:$0xff] }
 0x14e   :  { %1015 = vmatprep.subr.mxu0 %v2938_v59  ;;  %1086 = vmatprep.subr.mxu1 %v2943_v60  ;;  %v4411_v59 = vld [vmem:[#allocation24_spill] sm:$0xff] }
 0x14f   :  { %1016 = vmatpush1.msra.mxu0 %v2950_v61  ;;  %1087 = vmatpush1.msra.mxu1 %v2955_v62 }
 0x150   :  { %1017 = vmatprep.subr.mxu0 %v2962_v63  ;;  %1088 = vmatprep.subr.mxu1 %v2967_v0  ;;  %v4412_v63 = vld [vmem:[#allocation26_spill] sm:$0xff] }
 0x151   :  { %1018 = vmatpush1.msra.mxu0 %v2976_v2  ;;  %1089 = vmatpush1.msra.mxu1 %v2981_v3 }
 0x152   :  { %1019 = vmatprep.subr.mxu0 %v2993_v5  ;;  %1090 = vmatprep.subr.mxu1 %v2998_v6  ;;  %v4413_v6 = vld [vmem:[#allocation27_spill] sm:$0xff] }
 0x153   :  { %1020 = vmatpush1.msra.mxu0 %v3005_v7  ;;  %1091 = vmatpush1.msra.mxu1 %v3010_v8  ;;  %v4414_v8 = vld [vmem:[#allocation25_spill] sm:$0xff] }
 0x154   :  { %1021 = vmatprep.subr.mxu0 %v3015_v9  ;;  %1092 = vmatprep.subr.mxu1 %v3020_v10 }
 0x155   :  { %1022 = vmatpush1.msra.mxu0 %v3027_v11  ;;  %1093 = vmatpush1.msra.mxu1 %v3032_v12 }
 0x156   :  { %1023 = vmatprep.subr.mxu0 %v3039_v13  ;;  %1094 = vmatprep.subr.mxu1 %v3044_v14 }
 0x157   :  { %1024 = vmatpush1.msra.mxu0 %v3051_v15  ;;  %1095 = vmatpush1.msra.mxu1 %v3056_v16 }
 0x158   :  { %1025 = vmatprep.subr.mxu0 %v4390_v36  ;;  %1096 = vmatprep.subr.mxu1 %v4391_v37  ;;  %v3515_v36 = vld [vmem:[%s4272_s2 + $0x198] sm:$0xff]  ;;  %v3522_v37 = vld [vmem:[%s4272_s2 + $0x180] sm:$0xff] }
 0x159   :  { %1026 = vmatpush1.msra.mxu0 %v4392_v38  ;;  %1097 = vmatpush1.msra.mxu1 %v4393_v39  ;;  %v3527_v38 = vld [vmem:[%s4272_s2 + $0x190] sm:$0xff]  ;;  %v3534_v39 = vld [vmem:[%s4272_s2 + $0x168] sm:$0xff] }
 0x15a   :  { %1027 = vmatprep.subr.mxu0 %v4394_v40  ;;  %1098 = vmatprep.subr.mxu1 %v4395_v41  ;;  %v3539_v40 = vld [vmem:[%s4272_s2 + $0x178] sm:$0xff]  ;;  %v3546_v41 = vld [vmem:[%s4272_s2 + $0x160] sm:$0xff] }
 0x15b   :  { %1028 = vmatpush1.msra.mxu0 %v4396_v42  ;;  %1099 = vmatpush1.msra.mxu1 %v4397_v43  ;;  %v3551_v42 = vld [vmem:[%s4272_s2 + $0x170] sm:$0xff]  ;;  %v3558_v43 = vld [vmem:[%s4272_s2 + $0x148] sm:$0xff] }
 0x15c   :  { %1029 = vmatprep.subr.mxu0 %v4398_v44  ;;  %1100 = vmatprep.subr.mxu1 %v4399_v45  ;;  %v3563_v44 = vld [vmem:[%s4272_s2 + $0x158] sm:$0xff]  ;;  %v3570_v45 = vld [vmem:[%s4272_s2 + $0x140] sm:$0xff] }
 0x15d   :  { %1030 = vmatpush1.msra.mxu0 %v4400_v46  ;;  %1101 = vmatpush1.msra.mxu1 %v4401_v47  ;;  %v3575_v46 = vld [vmem:[%s4272_s2 + $0x150] sm:$0xff]  ;;  %v3582_v47 = vld [vmem:[%s4272_s2 + $0x128] sm:$0xff] }
 0x15e   :  { %1031 = vmatprep.subr.mxu0 %v4402_v48  ;;  %1102 = vmatprep.subr.mxu1 %v4403_v49  ;;  %v3587_v48 = vld [vmem:[%s4272_s2 + $0x138] sm:$0xff]  ;;  %v3594_v49 = vld [vmem:[%s4272_s2 + $0x120] sm:$0xff] }
 0x15f   :  { %1032 = vmatpush1.msra.mxu0 %v4404_v51  ;;  %1103 = vmatpush1.msra.mxu1 %v4405_v52  ;;  %v3599_v51 = vld [vmem:[%s4272_s2 + $0x130] sm:$0xff]  ;;  %v3606_v52 = vld [vmem:[%s4272_s2 + $0x108] sm:$0xff] }
 0x160   :  { %1033 = vmatprep.subr.mxu0 %v4406_v53  ;;  %1104 = vmatprep.subr.mxu1 %v4407_v54  ;;  %v3611_v53 = vld [vmem:[%s4272_s2 + $0x118] sm:$0xff]  ;;  %v3616_v54 = vld [vmem:[%s4272_s2 + $0x100] sm:$0xff] }
 0x161   :  { %1034 = vmatpush1.msra.mxu0 %v4408_v55  ;;  %1067 = vmatprep.mubr.f32.mxu0 %v4409_v56  ;;  %v3623_v55 = vld [vmem:[%s4272_s2 + $0x110] sm:$0xff] }
 0x162   :  { %1105 = vmatpush1.msra.mxu1 %v4410_v57  ;;  %1138 = vmatprep.mubr.f32.mxu1 %v4409_v56  ;;  %v3628_v57 = vld [vmem:[%s4272_s2 + $0xe8] sm:$0xff] }
 0x163   :  { %1248 = vmatprep.subr.mxu0 %v3438_v27  ;;  %1319 = vmatprep.subr.mxu1 %v3443_v32 }
 0x202   :  { %v824_v58 = vpop.f32.mrf.mxu0  ;;  %v895_v2 = vpop.f32.mrf.mxu1 }
 0x203   :  { %v900_v60 = vadd.f32 %v824_v58, %v4411_v59  ;;  %v902_v9 = vadd.f32 %v895_v2, %v4414_v8  ;;  %v3633_v58 = vld [vmem:[%s4272_s2 + $0xf8] sm:$0xff]  ;;  %v3640_v59 = vld [vmem:[%s4272_s2 + $0xe0] sm:$0xff]  ;;  %v3674_v2 = vld [vmem:[%s4272_s2 + $0xa8] sm:$0xff] }
 0x204   :  { %v826_v61 = vpop.f32.mrf.mxu0  ;;  %v897_v5 = vpop.f32.mrf.mxu1  ;;  %v3703_v8 = vld [vmem:[%s4272_s2 + $0x98] sm:$0xff] }
 0x205   :  { %v2452_v62 = vmul.f32 -1.442695, %v900_v60  ;;  %v901_v0 = vadd.f32 %v826_v61, %v4412_v63  ;;  %v903_v7 = vadd.f32 %v897_v5, %v4413_v6  ;;  %v3645_v60 = vld [vmem:[%s4272_s2 + $0xf0] sm:$0xff]  ;;  %v3650_v61 = vld [vmem:[%s4272_s2 + $0xc8] sm:$0xff]  ;;  %v3662_v63 = vld [vmem:[%s4272_s2 + $0xc0] sm:$0xff] }
 0x206   :  { %v3686_v5 = vld [vmem:[%s4272_s2 + $0xa0] sm:$0xff]  ;;  %v3691_v6 = vld [vmem:[%s4272_s2 + $0xb0] sm:$0xff] }
 0x207   :  { %2550 = vpow2.f32 %v2452_v62  ;;  %v2453_v3 = vmul.f32 -1.442695, %v901_v0  ;;  %v2454_v10 = vmul.f32 -1.442695, %v903_v7  ;;  %v3657_v62 = vld [vmem:[%s4272_s2 + $0xd8] sm:$0xff]  ;;  %v3667_v0 = vld [vmem:[%s4272_s2 + $0xd0] sm:$0xff] }
 0x208   :  { %v3698_v7 = vld [vmem:[%s4272_s2 + $0x88] sm:$0xff] }
 0x209   :  { %2552 = vpow2.f32 %v2453_v3  ;;  %v3679_v3 = vld [vmem:[%s4272_s2 + $0xb8] sm:$0xff] }
 0x20a   :  { %2554 = vtanh.f32 %v902_v9  ;;  %v3710_v9 = vld [vmem:[%s4272_s2 + $0x80] sm:$0xff] }
 0x20b   :  { %2556 = vpow2.f32 %v2454_v10  ;;  %v3715_v10 = vld [vmem:[%s4272_s2 + $0x90] sm:$0xff] }
 0x20c   :  { %4417 = vst [vmem:[#allocation6_spill] sm:$0xff] %v3715_v10 }
 0x214   :  { %v2551_v11 = vpop.eup %2550 }
 0x215   :  { %v910_v12 = vadd.f32 1.0, %v2551_v11  ;;  %v3722_v11 = vld [vmem:[%s4272_s2 + $0x68] sm:$0xff] }
 0x216   :  { %v2553_v13 = vpop.eup %2552  ;;  %4418 = vst [vmem:[#allocation7_spill] sm:$0xff] %v3722_v11 }
 0x217   :  { %2558 = vrcp.f32 %v910_v12  ;;  %v911_v14 = vadd.f32 1.0, %v2553_v13  ;;  %v2555_v15 = vpop.eup %2554  ;;  %v3727_v12 = vld [vmem:[%s4272_s2 + $0x78] sm:$0xff]  ;;  %v3734_v13 = vld [vmem:[%s4272_s2 + $0x60] sm:$0xff] }
 0x218   :  { %v2557_v16 = vpop.eup %2556  ;;  %4419 = vst [vmem:[#allocation8_spill] sm:$0xff] %v3727_v12  ;;  %4420 = vst [vmem:[#allocation9_spill] sm:$0xff] %v3734_v13 }
 0x219   :  { %2560 = vrcp.f32 %v911_v14  ;;  %v920_v17 = vadd.f32 1.0, %v2557_v16  ;;  %v3739_v14 = vld [vmem:[%s4272_s2 + $0x70] sm:$0xff]  ;;  %v3751_v16 = vld [vmem:[%s4272_s2 + $0x58] sm:$0xff] }
 0x21a   :  { %4421 = vst [vmem:[#allocation10_spill] sm:$0xff] %v3739_v14  ;;  %4423 = vst [vmem:[#allocation12_spill] sm:$0xff] %v3751_v16 }
 0x21b   :  { %2562 = vrcp.f32 %v920_v17  ;;  %v3775_v17 = vld [vmem:[%s4272_s2 + $0x38] sm:$0xff] }
 0x21c   :  { %4427 = vst [vmem:[#allocation16_spill] sm:$0xff] %v3775_v17 }
 0x224   :  { %v2559_v50 = vpop.eup %2558 }
 0x225   :  { %v925_v1 = vmul.f32 %v2559_v50, %v2555_v15  ;;  %v3746_v15 = vld [vmem:[%s4272_s2 + $0x48] sm:$0xff]  ;;  %v3758_v50 = vld [vmem:[%s4272_s2 + $0x40] sm:$0xff] }
 0x226   :  { %v2561_v18 = vpop.eup %2560  ;;  %4422 = vst [vmem:[#allocation11_spill] sm:$0xff] %v3746_v15  ;;  %4424 = vst [vmem:[#allocation13_spill] sm:$0xff] %v3758_v50 }
 0x227   :  { %v924_v25 = vmul.f32 %v2561_v18, %v3352_v28  ;;  %v3491_v28 = vld [vmem:[%s4272_s2 + $0x1b8] sm:$0xff]  ;;  %v3770_v18 = vld [vmem:[%s4272_s2 + $0x28] sm:$0xff] }
 0x228   :  { %v2563_v4 = vpop.eup %2562  ;;  %4426 = vst [vmem:[#allocation15_spill] sm:$0xff] %v3770_v18 }
 0x229   :  { %v3427_v26 = vadd.f32 %v925_v1, %v924_v25  ;;  %v3763_v1 = vld [vmem:[%s4272_s2 + $0x50] sm:$0xff]  ;;  %v3782_v25 = vld [vmem:[%s4272_s2 + $0x20] sm:$0xff] }
 0x22a   :  { %4425 = vst [vmem:[#allocation14_spill] sm:$0xff] %v3763_v1  ;;  %4428 = vst [vmem:[#allocation17_spill] sm:$0xff] %v3782_v25 }
 0x22b   :  { %2564 = vtanh.f32 %v3427_v26 }
 0x238   :  { %v2565_v34 = vpop.eup %2564 }
 0x239   :  { %v928_v24 = vmul.f32 %v2565_v34, %v2563_v4  ;;  %v3787_v4 = vld [vmem:[%s4272_s2 + $0x30] sm:$0xff]  ;;  %v3794_v34 = vld [vmem:[%s4272_s2 + $0x8] sm:$0xff] }
 0x23a   :  { %4429 = vst [vmem:[#allocation18_spill] sm:$0xff] %v3787_v4  ;;  %4430 = vst [vmem:[#allocation19_spill] sm:$0xff] %v3794_v34 }
 0x23b   :  { %2455 = vst [vmem:[%s4274_s4 + $0x8] sm:$0xff] %v928_v24  ;;  %1068 = vmatmul.mubr.f32.vlgmr.msra.gmra.mxu0 %v928_v24  ;;  %1139 = vmatmul.mubr.f32.vlgmr.msra.gmra.mxu1 %v928_v24  ;;  %v3799_v24 = vld [vmem:[%s4272_s2 + $0x18] sm:$0xff] }
 0x23c   :  { %1312 = vmatprep.mubr.f32.mxu0 %v4409_v56  ;;  %1383 = vmatprep.mubr.f32.mxu1 %v4409_v56  ;;  %4431 = vst [vmem:[#allocation20_spill] sm:$0xff] %v3799_v24  ;;  %v3806_v56 = vld [vmem:[%s4272_s2] sm:$0xff] }
 0x23d   :  { %1249 = vmatpush1.msra.mxu0 %v3450_v23  ;;  %1320 = vmatpush1.msra.mxu1 %v3455_v22  ;;  %4432 = vst [vmem:[#allocation21_spill] sm:$0xff] %v3806_v56 }
 0x23e   :  { %1250 = vmatprep.subr.mxu0 %v3462_v31  ;;  %1321 = vmatprep.subr.mxu1 %v3467_v20 }
 0x23f   :  { %1251 = vmatpush1.msra.mxu0 %v3474_v19  ;;  %1322 = vmatpush1.msra.mxu1 %v3479_v33 }
 0x240   :  { %1252 = vmatprep.subr.mxu0 %v3486_v30  ;;  %1323 = vmatprep.subr.mxu1 %v3491_v28 }
 0x241   :  { %1253 = vmatpush1.msra.mxu0 %v3498_v35  ;;  %1324 = vmatpush1.msra.mxu1 %v3503_v21 }
 0x242   :  { %1254 = vmatprep.subr.mxu0 %v3510_v29  ;;  %1325 = vmatprep.subr.mxu1 %v3515_v36 }
 0x243   :  { %1255 = vmatpush1.msra.mxu0 %v3522_v37  ;;  %1326 = vmatpush1.msra.mxu1 %v3527_v38 }
 0x244   :  { %1256 = vmatprep.subr.mxu0 %v3534_v39  ;;  %1327 = vmatprep.subr.mxu1 %v3539_v40 }
 0x245   :  { %1257 = vmatpush1.msra.mxu0 %v3546_v41  ;;  %1328 = vmatpush1.msra.mxu1 %v3551_v42 }
 0x246   :  { %1258 = vmatprep.subr.mxu0 %v3558_v43  ;;  %1329 = vmatprep.subr.mxu1 %v3563_v44 }
 0x247   :  { %1259 = vmatpush1.msra.mxu0 %v3570_v45  ;;  %1330 = vmatpush1.msra.mxu1 %v3575_v46 }
 0x248   :  { %1260 = vmatprep.subr.mxu0 %v3582_v47  ;;  %1331 = vmatprep.subr.mxu1 %v3587_v48 }
 0x249   :  { %1261 = vmatpush1.msra.mxu0 %v3594_v49  ;;  %1332 = vmatpush1.msra.mxu1 %v3599_v51 }
 0x24a   :  { %1262 = vmatprep.subr.mxu0 %v3606_v52  ;;  %1333 = vmatprep.subr.mxu1 %v3611_v53 }
 0x24b   :  { %1263 = vmatpush1.msra.mxu0 %v3616_v54  ;;  %1334 = vmatpush1.msra.mxu1 %v3623_v55 }
 0x24c   :  { %1264 = vmatprep.subr.mxu0 %v3628_v57  ;;  %1335 = vmatprep.subr.mxu1 %v3633_v58 }
 0x24d   :  { %1265 = vmatpush1.msra.mxu0 %v3640_v59  ;;  %1336 = vmatpush1.msra.mxu1 %v3645_v60 }
 0x24e   :  { %1266 = vmatprep.subr.mxu0 %v3650_v61  ;;  %1337 = vmatprep.subr.mxu1 %v3657_v62 }
 0x24f   :  { %1267 = vmatpush1.msra.mxu0 %v3662_v63  ;;  %1338 = vmatpush1.msra.mxu1 %v3667_v0 }
 0x250   :  { %1268 = vmatprep.subr.mxu0 %v3674_v2  ;;  %1339 = vmatprep.subr.mxu1 %v3679_v3 }
 0x251   :  { %1269 = vmatpush1.msra.mxu0 %v3686_v5  ;;  %1340 = vmatpush1.msra.mxu1 %v3691_v6 }
 0x252   :  { %1270 = vmatprep.subr.mxu0 %v3698_v7  ;;  %1341 = vmatprep.subr.mxu1 %v3703_v8 }
 0x253   :  { %1271 = vmatpush1.msra.mxu0 %v3710_v9  ;;  %1342 = vmatpush1.msra.mxu1 %v3715_v10 }
 0x254   :  { %1272 = vmatprep.subr.mxu0 %v3722_v11  ;;  %1343 = vmatprep.subr.mxu1 %v3727_v12  ;;  %v4437_v12 = vld [vmem:[#allocation29_spill] sm:$0xff] }
 0x255   :  { %1273 = vmatpush1.msra.mxu0 %v3734_v13  ;;  %1344 = vmatpush1.msra.mxu1 %v3739_v14  ;;  %v4436_v13 = vld [vmem:[#allocation31_spill] sm:$0xff] }
 0x256   :  { %1274 = vmatprep.subr.mxu0 %v3746_v15  ;;  %1345 = vmatprep.subr.mxu1 %v3751_v16 }
 0x257   :  { %1275 = vmatpush1.msra.mxu0 %v3758_v50  ;;  %1346 = vmatpush1.msra.mxu1 %v3763_v1  ;;  %v3811_v1 = vld [vmem:[%s4272_s2 + $0x10] sm:$0xff] }
 0x258   :  { %1276 = vmatprep.subr.mxu0 %v3770_v18  ;;  %1347 = vmatprep.subr.mxu1 %v3775_v17  ;;  %4433 = vst [vmem:[#allocation22_spill] sm:$0xff] %v3811_v1  ;;  %v4434_v18 = vld [vmem:[#allocation28_spill] sm:$0xff] }
 0x259   :  { %1277 = vmatpush1.msra.mxu0 %v3782_v25  ;;  %1348 = vmatpush1.msra.mxu1 %v3787_v4  ;;  %v4435_v25 = vld [vmem:[#allocation30_spill] sm:$0xff] }
 0x25a   :  { %1278 = vmatprep.subr.mxu0 %v3794_v34  ;;  %1349 = vmatprep.subr.mxu1 %v3799_v24 }
 0x25b   :  { %1279 = vmatpush1.msra.mxu0 %v3806_v56  ;;  %1350 = vmatpush1.msra.mxu1 %v3811_v1 }
 0x25c   :  { %1493 = vmatprep.subr.mxu0 %v3438_v27  ;;  %1564 = vmatprep.subr.mxu1 %v3443_v32 }
 0x2fb   :  { %v1069_v17 = vpop.f32.mrf.mxu0  ;;  %v1140_v4 = vpop.f32.mrf.mxu1 }
 0x2fc   :  { %v1145_v50 = vadd.f32 %v1069_v17, %v4434_v18  ;;  %v1147_v1 = vadd.f32 %v1140_v4, %v4437_v12  ;;  %v4443_v4 = vld [vmem:[#allocation11_spill] sm:$0xff] }
 0x2fd   :  { %v1071_v16 = vpop.f32.mrf.mxu0  ;;  %v1142_v24 = vpop.f32.mrf.mxu1 }
 0x2fe   :  { %v2456_v15 = vmul.f32 -1.442695, %v1145_v50  ;;  %v1146_v14 = vadd.f32 %v1071_v16, %v4435_v25  ;;  %v1148_v56 = vadd.f32 %v1142_v24, %v4436_v13  ;;  %v4444_v24 = vld [vmem:[#allocation12_spill] sm:$0xff] }
 0x300   :  { %2566 = vpow2.f32 %v2456_v15  ;;  %v2457_v34 = vmul.f32 -1.442695, %v1146_v14  ;;  %v2458_v11 = vmul.f32 -1.442695, %v1148_v56 }
 0x302   :  { %2568 = vpow2.f32 %v2457_v34 }
 0x303   :  { %2570 = vtanh.f32 %v1147_v1  ;;  %v4442_v1 = vld [vmem:[#allocation10_spill] sm:$0xff] }
 0x304   :  { %2572 = vpow2.f32 %v2458_v11  ;;  %v4441_v11 = vld [vmem:[#allocation9_spill] sm:$0xff] }
 0x30d   :  { %v2567_v27 = vpop.eup %2566 }
 0x30e   :  { %v1155_v10 = vadd.f32 1.0, %v2567_v27 }
 0x30f   :  { %v2569_v32 = vpop.eup %2568 }
 0x310   :  { %2574 = vrcp.f32 %v1155_v10  ;;  %v1156_v18 = vadd.f32 1.0, %v2569_v32  ;;  %v2571_v50 = vpop.eup %2570  ;;  %v4439_v32 = vld [vmem:[#allocation7_spill] sm:$0xff]  ;;  %v4440_v10 = vld [vmem:[#allocation8_spill] sm:$0xff] }
 0x311   :  { %v2573_v16 = vpop.eup %2572 }
 0x312   :  { %2576 = vrcp.f32 %v1156_v18  ;;  %v1165_v25 = vadd.f32 1.0, %v2573_v16  ;;  %v4445_v18 = vld [vmem:[#allocation13_spill] sm:$0xff]  ;;  %v4447_v16 = vld [vmem:[#allocation15_spill] sm:$0xff] }
 0x314   :  { %2578 = vrcp.f32 %v1165_v25  ;;  %v4451_v25 = vld [vmem:[#allocation19_spill] sm:$0xff] }
 0x31d   :  { %v2575_v15 = vpop.eup %2574 }
 0x31e   :  { %v1170_v17 = vmul.f32 %v2575_v15, %v2571_v50  ;;  %v4446_v50 = vld [vmem:[#allocation14_spill] sm:$0xff]  ;;  %v4448_v15 = vld [vmem:[#allocation16_spill] sm:$0xff] }
 0x31f   :  { %v2577_v14 = vpop.eup %2576 }
 0x320   :  { %v1169_v34 = vmul.f32 %v2577_v14, %v3427_v26  ;;  %v4438_v26 = vld [vmem:[#allocation6_spill] sm:$0xff] }
 0x321   :  { %v2579_v56 = vpop.eup %2578  ;;  %v4450_v14 = vld [vmem:[#allocation18_spill] sm:$0xff] }
 0x322   :  { %v3826_v13 = vadd.f32 %v1170_v17, %v1169_v34  ;;  %v4449_v17 = vld [vmem:[#allocation17_spill] sm:$0xff]  ;;  %v4452_v34 = vld [vmem:[#allocation20_spill] sm:$0xff] }
 0x324   :  { %2580 = vtanh.f32 %v3826_v13 }
 0x331   :  { %v2581_v27 = vpop.eup %2580 }
 0x332   :  { %v1173_v12 = vmul.f32 %v2581_v27, %v2579_v56  ;;  %v4453_v56 = vld [vmem:[#allocation21_spill] sm:$0xff]  ;;  %v4454_v27 = vmov 0.0  }
 0x334   :  { %2459 = vst [vmem:[%s4274_s4 + $0x10] sm:$0xff] %v1173_v12  ;;  %1313 = vmatmul.mubr.f32.vlgmr.msra.gmra.mxu0 %v1173_v12  ;;  %1384 = vmatmul.mubr.f32.vlgmr.msra.gmra.mxu1 %v1173_v12  ;;  %v4455_v12 = vld [vmem:[#allocation22_spill] sm:$0xff] }
 0x335   :  { %1494 = vmatpush1.msra.mxu0 %v3450_v23  ;;  %1565 = vmatpush1.msra.mxu1 %v3455_v22 }
 0x336   :  { %1495 = vmatprep.subr.mxu0 %v3462_v31  ;;  %1566 = vmatprep.subr.mxu1 %v3467_v20 }
 0x337   :  { %1496 = vmatpush1.msra.mxu0 %v3474_v19  ;;  %1567 = vmatpush1.msra.mxu1 %v3479_v33 }
 0x338   :  { %1497 = vmatprep.subr.mxu0 %v3486_v30  ;;  %1568 = vmatprep.subr.mxu1 %v3491_v28 }
 0x339   :  { %1498 = vmatpush1.msra.mxu0 %v3498_v35  ;;  %1569 = vmatpush1.msra.mxu1 %v3503_v21 }
 0x33a   :  { %1499 = vmatprep.subr.mxu0 %v3510_v29  ;;  %1570 = vmatprep.subr.mxu1 %v3515_v36 }
 0x33b   :  { %1500 = vmatpush1.msra.mxu0 %v3522_v37  ;;  %1571 = vmatpush1.msra.mxu1 %v3527_v38 }
 0x33c   :  { %1501 = vmatprep.subr.mxu0 %v3534_v39  ;;  %1572 = vmatprep.subr.mxu1 %v3539_v40 }
 0x33d   :  { %1502 = vmatpush1.msra.mxu0 %v3546_v41  ;;  %1573 = vmatpush1.msra.mxu1 %v3551_v42 }
 0x33e   :  { %1503 = vmatprep.subr.mxu0 %v3558_v43  ;;  %1574 = vmatprep.subr.mxu1 %v3563_v44 }
 0x33f   :  { %1504 = vmatpush1.msra.mxu0 %v3570_v45  ;;  %1575 = vmatpush1.msra.mxu1 %v3575_v46 }
 0x340   :  { %1505 = vmatprep.subr.mxu0 %v3582_v47  ;;  %1576 = vmatprep.subr.mxu1 %v3587_v48 }
 0x341   :  { %1506 = vmatpush1.msra.mxu0 %v3594_v49  ;;  %1577 = vmatpush1.msra.mxu1 %v3599_v51 }
 0x342   :  { %1507 = vmatprep.subr.mxu0 %v3606_v52  ;;  %1578 = vmatprep.subr.mxu1 %v3611_v53 }
 0x343   :  { %1508 = vmatpush1.msra.mxu0 %v3616_v54  ;;  %1579 = vmatpush1.msra.mxu1 %v3623_v55 }
 0x344   :  { %1509 = vmatprep.subr.mxu0 %v3628_v57  ;;  %1580 = vmatprep.subr.mxu1 %v3633_v58 }
 0x345   :  { %1510 = vmatpush1.msra.mxu0 %v3640_v59  ;;  %1581 = vmatpush1.msra.mxu1 %v3645_v60 }
 0x346   :  { %1511 = vmatprep.subr.mxu0 %v3650_v61  ;;  %1582 = vmatprep.subr.mxu1 %v3657_v62 }
 0x347   :  { %1512 = vmatpush1.msra.mxu0 %v3662_v63  ;;  %1583 = vmatpush1.msra.mxu1 %v3667_v0 }
 0x348   :  { %1513 = vmatprep.subr.mxu0 %v3674_v2  ;;  %1584 = vmatprep.subr.mxu1 %v3679_v3 }
 0x349   :  { %1514 = vmatpush1.msra.mxu0 %v3686_v5  ;;  %1585 = vmatpush1.msra.mxu1 %v3691_v6 }
 0x34a   :  { %1515 = vmatprep.subr.mxu0 %v3698_v7  ;;  %1586 = vmatprep.subr.mxu1 %v3703_v8 }
 0x34b   :  { %1516 = vmatpush1.msra.mxu0 %v3710_v9  ;;  %1587 = vmatpush1.msra.mxu1 %v4438_v26 }
 0x34c   :  { %1517 = vmatprep.subr.mxu0 %v4439_v32  ;;  %1588 = vmatprep.subr.mxu1 %v4440_v10  ;;  %v4461_v10 = vld [vmem:[#allocation33_spill] sm:$0xff] }
 0x34d   :  { %1518 = vmatpush1.msra.mxu0 %v4441_v11  ;;  %1589 = vmatpush1.msra.mxu1 %v4442_v1  ;;  %v4460_v11 = vld [vmem:[#allocation35_spill] sm:$0xff] }
 0x34e   :  { %1519 = vmatprep.subr.mxu0 %v4443_v4  ;;  %1590 = vmatprep.subr.mxu1 %v4444_v24 }
 0x34f   :  { %1520 = vmatpush1.msra.mxu0 %v4445_v18  ;;  %1591 = vmatpush1.msra.mxu1 %v4446_v50  ;;  %v4456_v50 = vld [vmem:[#allocation4_spill] sm:$0xff] }
 0x350   :  { %1521 = vmatprep.subr.mxu0 %v4447_v16  ;;  %1592 = vmatprep.subr.mxu1 %v4448_v15  ;;  %v4457_v16 = vld [vmem:[#allocation5_spill] sm:$0xff] }
 0x351   :  { %1522 = vmatpush1.msra.mxu0 %v4449_v17  ;;  %1593 = vmatpush1.msra.mxu1 %v4450_v14  ;;  %v4458_v17 = vld [vmem:[#allocation32_spill] sm:$0xff] }
 0x352   :  { %1523 = vmatprep.subr.mxu0 %v4451_v25  ;;  %1594 = vmatprep.subr.mxu1 %v4452_v34  ;;  %v4459_v25 = vld [vmem:[#allocation34_spill] sm:$0xff] }
 0x353   :  { %1524 = vmatpush1.msra.mxu0 %v4453_v56  ;;  %1557 = vmatprep.mubr.f32.mxu0 %v4454_v27 }
 0x354   :  { %1595 = vmatpush1.msra.mxu1 %v4455_v12  ;;  %1628 = vmatprep.mubr.f32.mxu1 %v4454_v27 }
 0x355   :  { %1738 = vmatprep.subr.mxu0 %v4456_v50  ;;  %1809 = vmatprep.subr.mxu1 %v4457_v16 }
 0x3f4   :  { %v1314_v15 = vpop.f32.mrf.mxu0  ;;  %v1385_v34 = vpop.f32.mrf.mxu1 }
 0x3f5   :  { %v1390_v18 = vadd.f32 %v1314_v15, %v4458_v17  ;;  %v1392_v27 = vadd.f32 %v1385_v34, %v4461_v10  ;;  %v4466_v34 = vld [vmem:[#allocation10_spill] sm:$0xff] }
 0x3f6   :  { %v1316_v14 = vpop.f32.mrf.mxu0  ;;  %v1387_v1 = vpop.f32.mrf.mxu1 }
 0x3f7   :  { %v2460_v24 = vmul.f32 -1.442695, %v1390_v18  ;;  %v1391_v4 = vadd.f32 %v1316_v14, %v4459_v25  ;;  %v1393_v12 = vadd.f32 %v1387_v1, %v4460_v11 }
 0x3f9   :  { %2582 = vpow2.f32 %v2460_v24  ;;  %v2461_v56 = vmul.f32 -1.442695, %v1391_v4  ;;  %v2462_v32 = vmul.f32 -1.442695, %v1393_v12  ;;  %v4468_v12 = vld [vmem:[#allocation12_spill] sm:$0xff] }
 0x3fb   :  { %2584 = vpow2.f32 %v2461_v56 }
 0x3fc   :  { %2586 = vtanh.f32 %v1392_v27  ;;  %v4467_v27 = vld [vmem:[#allocation11_spill] sm:$0xff] }
 0x3fd   :  { %2588 = vpow2.f32 %v2462_v32  ;;  %v4464_v32 = vld [vmem:[#allocation8_spill] sm:$0xff] }
 0x406   :  { %v2583_v50 = vpop.eup %2582 }
 0x407   :  { %v1400_v26 = vadd.f32 1.0, %v2583_v50 }
 0x408   :  { %v2585_v16 = vpop.eup %2584 }
 0x409   :  { %2590 = vrcp.f32 %v1400_v26  ;;  %v1401_v15 = vadd.f32 1.0, %v2585_v16  ;;  %v2587_v18 = vpop.eup %2586  ;;  %v4463_v26 = vld [vmem:[#allocation7_spill] sm:$0xff]  ;;  %v4465_v16 = vld [vmem:[#allocation9_spill] sm:$0xff] }
 0x40a   :  { %v2589_v17 = vpop.eup %2588 }
 0x40b   :  { %2592 = vrcp.f32 %v1401_v15  ;;  %v1410_v25 = vadd.f32 1.0, %v2589_v17  ;;  %v4469_v15 = vld [vmem:[#allocation13_spill] sm:$0xff]  ;;  %v4471_v17 = vld [vmem:[#allocation15_spill] sm:$0xff] }
 0x40d   :  { %2594 = vrcp.f32 %v1410_v25  ;;  %v4475_v25 = vld [vmem:[#allocation19_spill] sm:$0xff] }
 0x416   :  { %v2591_v24 = vpop.eup %2590 }
 0x417   :  { %v1415_v14 = vmul.f32 %v2591_v24, %v2587_v18  ;;  %v4470_v18 = vld [vmem:[#allocation14_spill] sm:$0xff]  ;;  %v4472_v24 = vld [vmem:[#allocation16_spill] sm:$0xff] }
 0x418   :  { %v2593_v4 = vpop.eup %2592 }
 0x419   :  { %v1414_v56 = vmul.f32 %v2593_v4, %v3826_v13  ;;  %v4462_v13 = vld [vmem:[#allocation6_spill] sm:$0xff] }
 0x41a   :  { %v2595_v10 = vpop.eup %2594  ;;  %v4474_v4 = vld [vmem:[#allocation18_spill] sm:$0xff] }
 0x41b   :  { %v3903_v11 = vadd.f32 %v1415_v14, %v1414_v56  ;;  %v4473_v14 = vld [vmem:[#allocation17_spill] sm:$0xff]  ;;  %v4476_v56 = vld [vmem:[#allocation20_spill] sm:$0xff] }
 0x41d   :  { %2596 = vtanh.f32 %v3903_v11 }
 0x42a   :  { %v2597_v1 = vpop.eup %2596 }
 0x42b   :  { %v1418_v50 = vmul.f32 %v2597_v1, %v2595_v10  ;;  %v4477_v10 = vld [vmem:[#allocation21_spill] sm:$0xff]  ;;  %v4478_v1 = vmov 0.0  }
 0x42d   :  { %2463 = vst [vmem:[%s4274_s4 + $0x18] sm:$0xff] %v1418_v50  ;;  %1558 = vmatmul.mubr.f32.vlgmr.msra.gmra.mxu0 %v1418_v50  ;;  %1629 = vmatmul.mubr.f32.vlgmr.msra.gmra.mxu1 %v1418_v50  ;;  %v4479_v50 = vld [vmem:[#allocation22_spill] sm:$0xff] }
 0x42e   :  { %1739 = vmatpush1.msra.mxu0 %v3450_v23  ;;  %1810 = vmatpush1.msra.mxu1 %v3455_v22 }
 0x42f   :  { %1740 = vmatprep.subr.mxu0 %v3462_v31  ;;  %1811 = vmatprep.subr.mxu1 %v3467_v20 }
 0x430   :  { %1741 = vmatpush1.msra.mxu0 %v3474_v19  ;;  %1812 = vmatpush1.msra.mxu1 %v3479_v33 }
 0x431   :  { %1742 = vmatprep.subr.mxu0 %v3486_v30  ;;  %1813 = vmatprep.subr.mxu1 %v3491_v28 }
 0x432   :  { %1743 = vmatpush1.msra.mxu0 %v3498_v35  ;;  %1814 = vmatpush1.msra.mxu1 %v3503_v21 }
 0x433   :  { %1744 = vmatprep.subr.mxu0 %v3510_v29  ;;  %1815 = vmatprep.subr.mxu1 %v3515_v36 }
 0x434   :  { %1745 = vmatpush1.msra.mxu0 %v3522_v37  ;;  %1816 = vmatpush1.msra.mxu1 %v3527_v38 }
 0x435   :  { %1746 = vmatprep.subr.mxu0 %v3534_v39  ;;  %1817 = vmatprep.subr.mxu1 %v3539_v40 }
 0x436   :  { %1747 = vmatpush1.msra.mxu0 %v3546_v41  ;;  %1818 = vmatpush1.msra.mxu1 %v3551_v42 }
 0x437   :  { %1748 = vmatprep.subr.mxu0 %v3558_v43  ;;  %1819 = vmatprep.subr.mxu1 %v3563_v44 }
 0x438   :  { %1749 = vmatpush1.msra.mxu0 %v3570_v45  ;;  %1820 = vmatpush1.msra.mxu1 %v3575_v46 }
 0x439   :  { %1750 = vmatprep.subr.mxu0 %v3582_v47  ;;  %1821 = vmatprep.subr.mxu1 %v3587_v48 }
 0x43a   :  { %1751 = vmatpush1.msra.mxu0 %v3594_v49  ;;  %1822 = vmatpush1.msra.mxu1 %v3599_v51 }
 0x43b   :  { %1752 = vmatprep.subr.mxu0 %v3606_v52  ;;  %1823 = vmatprep.subr.mxu1 %v3611_v53 }
 0x43c   :  { %1753 = vmatpush1.msra.mxu0 %v3616_v54  ;;  %1824 = vmatpush1.msra.mxu1 %v3623_v55 }
 0x43d   :  { %1754 = vmatprep.subr.mxu0 %v3628_v57  ;;  %1825 = vmatprep.subr.mxu1 %v3633_v58 }
 0x43e   :  { %1755 = vmatpush1.msra.mxu0 %v3640_v59  ;;  %1826 = vmatpush1.msra.mxu1 %v3645_v60 }
 0x43f   :  { %1756 = vmatprep.subr.mxu0 %v3650_v61  ;;  %1827 = vmatprep.subr.mxu1 %v3657_v62 }
 0x440   :  { %1757 = vmatpush1.msra.mxu0 %v3662_v63  ;;  %1828 = vmatpush1.msra.mxu1 %v3667_v0 }
 0x441   :  { %1758 = vmatprep.subr.mxu0 %v3674_v2  ;;  %1829 = vmatprep.subr.mxu1 %v3679_v3 }
 0x442   :  { %1759 = vmatpush1.msra.mxu0 %v3686_v5  ;;  %1830 = vmatpush1.msra.mxu1 %v3691_v6 }
 0x443   :  { %1760 = vmatprep.subr.mxu0 %v3698_v7  ;;  %1831 = vmatprep.subr.mxu1 %v3703_v8 }
 0x444   :  { %1761 = vmatpush1.msra.mxu0 %v3710_v9  ;;  %1832 = vmatpush1.msra.mxu1 %v4462_v13 }
 0x445   :  { %1762 = vmatprep.subr.mxu0 %v4463_v26  ;;  %1833 = vmatprep.subr.mxu1 %v4464_v32  ;;  %v4485_v32 = vld [vmem:[#allocation37_spill] sm:$0xff] }
 0x446   :  { %1763 = vmatpush1.msra.mxu0 %v4465_v16  ;;  %1834 = vmatpush1.msra.mxu1 %v4466_v34  ;;  %v4484_v16 = vld [vmem:[#allocation39_spill] sm:$0xff] }
 0x447   :  { %1764 = vmatprep.subr.mxu0 %v4467_v27  ;;  %1835 = vmatprep.subr.mxu1 %v4468_v12 }
 0x448   :  { %1765 = vmatpush1.msra.mxu0 %v4469_v15  ;;  %1836 = vmatpush1.msra.mxu1 %v4470_v18  ;;  %v4480_v18 = vld [vmem:[#allocation4_spill] sm:$0xff] }
 0x449   :  { %1766 = vmatprep.subr.mxu0 %v4471_v17  ;;  %1837 = vmatprep.subr.mxu1 %v4472_v24  ;;  %v4481_v17 = vld [vmem:[#allocation5_spill] sm:$0xff] }
 0x44a   :  { %1767 = vmatpush1.msra.mxu0 %v4473_v14  ;;  %1838 = vmatpush1.msra.mxu1 %v4474_v4  ;;  %v4482_v14 = vld [vmem:[#allocation36_spill] sm:$0xff] }
 0x44b   :  { %1768 = vmatprep.subr.mxu0 %v4475_v25  ;;  %1839 = vmatprep.subr.mxu1 %v4476_v56  ;;  %v4483_v25 = vld [vmem:[#allocation38_spill] sm:$0xff] }
 0x44c   :  { %1769 = vmatpush1.msra.mxu0 %v4477_v10  ;;  %1802 = vmatprep.mubr.f32.mxu0 %v4478_v1 }
 0x44d   :  { %1840 = vmatpush1.msra.mxu1 %v4479_v50  ;;  %1873 = vmatprep.mubr.f32.mxu1 %v4478_v1 }
 0x44e   :  { %1983 = vmatprep.subr.mxu0 %v4480_v18  ;;  %2054 = vmatprep.subr.mxu1 %v4481_v17 }
 0x4ed   :  { %v1559_v24 = vpop.f32.mrf.mxu0  ;;  %v1630_v56 = vpop.f32.mrf.mxu1 }
 0x4ee   :  { %v1635_v15 = vadd.f32 %v1559_v24, %v4482_v14  ;;  %v1637_v1 = vadd.f32 %v1630_v56, %v4485_v32 }
 0x4ef   :  { %v1561_v4 = vpop.f32.mrf.mxu0  ;;  %v1632_v34 = vpop.f32.mrf.mxu1 }
 0x4f0   :  { %v2464_v12 = vmul.f32 -1.442695, %v1635_v15  ;;  %v1636_v27 = vadd.f32 %v1561_v4, %v4483_v25  ;;  %v1638_v50 = vadd.f32 %v1632_v34, %v4484_v16 }
 0x4f2   :  { %2598 = vpow2.f32 %v2464_v12  ;;  %v2465_v10 = vmul.f32 -1.442695, %v1636_v27  ;;  %v2466_v26 = vmul.f32 -1.442695, %v1638_v50  ;;  %v2227_v50 = vld [vmem:[%s4272_s2 + $0x1f8] sm:$0xff] }
 0x4f4   :  { %2600 = vpow2.f32 %v2465_v10 }
 0x4f5   :  { %2602 = vtanh.f32 %v1637_v1  ;;  %v2225_v1 = vld [vmem:[%s4272_s2 + $0x1e8] sm:$0xff] }
 0x4f6   :  { %2604 = vpow2.f32 %v2466_v26 }
 0x4ff   :  { %v2599_v18 = vpop.eup %2598 }
 0x500   :  { %v1645_v13 = vadd.f32 1.0, %v2599_v18  ;;  %v2224_v18 = vld [vmem:[%s4272_s2 + $0x1e0] sm:$0xff] }
 0x501   :  { %v2601_v17 = vpop.eup %2600 }
 0x502   :  { %2606 = vrcp.f32 %v1645_v13  ;;  %v1646_v24 = vadd.f32 1.0, %v2601_v17  ;;  %v2603_v15 = vpop.eup %2602  ;;  %v2226_v17 = vld [vmem:[%s4272_s2 + $0x1f0] sm:$0xff] }
 0x503   :  { %v2605_v14 = vpop.eup %2604 }
 0x504   :  { %2608 = vrcp.f32 %v1646_v24  ;;  %v1655_v25 = vadd.f32 1.0, %v2605_v14  ;;  %v2221_v24 = vld [vmem:[%s4272_s2 + $0x1c8] sm:$0xff]  ;;  %v2220_v14 = vld [vmem:[%s4272_s2 + $0x1c0] sm:$0xff] }
 0x506   :  { %2610 = vrcp.f32 %v1655_v25  ;;  %v2216_v25 = vld [vmem:[%s4272_s2 + $0x1a0] sm:$0xff] }
 0x50f   :  { %v2607_v12 = vpop.eup %2606 }
 0x510   :  { %v1660_v4 = vmul.f32 %v2607_v12, %v2603_v15  ;;  %v2223_v15 = vld [vmem:[%s4272_s2 + $0x1d8] sm:$0xff]  ;;  %v2222_v12 = vld [vmem:[%s4272_s2 + $0x1d0] sm:$0xff] }
 0x511   :  { %v2609_v27 = vpop.eup %2608 }
 0x512   :  { %v1659_v10 = vmul.f32 %v2609_v27, %v3903_v11  ;;  %v2219_v27 = vld [vmem:[%s4272_s2 + $0x1b8] sm:$0xff] }
 0x513   :  { %v2611_v32 = vpop.eup %2610 }
 0x514   :  { %v3980_v16 = vadd.f32 %v1660_v4, %v1659_v10  ;;  %v2217_v4 = vld [vmem:[%s4272_s2 + $0x1a8] sm:$0xff]  ;;  %v2218_v10 = vld [vmem:[%s4272_s2 + $0x1b0] sm:$0xff] }
 0x516   :  { %2612 = vtanh.f32 %v3980_v16 }
 0x523   :  { %v2613_v34 = vpop.eup %2612 }
 0x524   :  { %v1663_v56 = vmul.f32 %v2613_v34, %v2611_v32  ;;  %v2215_v32 = vld [vmem:[%s4272_s2 + $0x198] sm:$0xff]  ;;  %v2212_v34 = vld [vmem:[%s4272_s2 + $0x180] sm:$0xff] }
 0x526   :  { %2467 = vst [vmem:[%s4274_s4 + $0x20] sm:$0xff] %v1663_v56  ;;  %1803 = vmatmul.mubr.f32.vlgmr.msra.gmra.mxu0 %v1663_v56  ;;  %1874 = vmatmul.mubr.f32.vlgmr.msra.gmra.mxu1 %v1663_v56  ;;  %v2214_v56 = vld [vmem:[%s4272_s2 + $0x190] sm:$0xff] }
 0x527   :  { %1984 = vmatpush1.msra.mxu0 %v3450_v23  ;;  %2055 = vmatpush1.msra.mxu1 %v3455_v22  ;;  %v4486_v23 = vld [vmem:[#allocation6_spill] sm:$0xff]  ;;  %v4487_v22 = vld [vmem:[#allocation7_spill] sm:$0xff] }
 0x528   :  { %1985 = vmatprep.subr.mxu0 %v3462_v31  ;;  %2056 = vmatprep.subr.mxu1 %v3467_v20  ;;  %v4488_v31 = vld [vmem:[#allocation8_spill] sm:$0xff]  ;;  %v4489_v20 = vld [vmem:[#allocation9_spill] sm:$0xff] }
 0x529   :  { %1986 = vmatpush1.msra.mxu0 %v3474_v19  ;;  %2057 = vmatpush1.msra.mxu1 %v3479_v33  ;;  %v4490_v19 = vld [vmem:[#allocation10_spill] sm:$0xff]  ;;  %v4491_v33 = vld [vmem:[#allocation11_spill] sm:$0xff] }
 0x52a   :  { %1987 = vmatprep.subr.mxu0 %v3486_v30  ;;  %2058 = vmatprep.subr.mxu1 %v3491_v28  ;;  %v4492_v30 = vld [vmem:[#allocation12_spill] sm:$0xff]  ;;  %v4493_v28 = vld [vmem:[#allocation13_spill] sm:$0xff] }
 0x52b   :  { %1988 = vmatpush1.msra.mxu0 %v3498_v35  ;;  %2059 = vmatpush1.msra.mxu1 %v3503_v21  ;;  %v4494_v35 = vld [vmem:[#allocation14_spill] sm:$0xff]  ;;  %v4495_v21 = vld [vmem:[#allocation15_spill] sm:$0xff] }
 0x52c   :  { %1989 = vmatprep.subr.mxu0 %v3510_v29  ;;  %2060 = vmatprep.subr.mxu1 %v3515_v36  ;;  %v4496_v29 = vld [vmem:[#allocation16_spill] sm:$0xff]  ;;  %v4497_v36 = vld [vmem:[#allocation17_spill] sm:$0xff] }
 0x52d   :  { %1990 = vmatpush1.msra.mxu0 %v3522_v37  ;;  %2061 = vmatpush1.msra.mxu1 %v3527_v38  ;;  %v4498_v37 = vld [vmem:[#allocation18_spill] sm:$0xff]  ;;  %v4499_v38 = vld [vmem:[#allocation19_spill] sm:$0xff] }
 0x52e   :  { %1991 = vmatprep.subr.mxu0 %v3534_v39  ;;  %2062 = vmatprep.subr.mxu1 %v3539_v40  ;;  %v4500_v39 = vld [vmem:[#allocation20_spill] sm:$0xff]  ;;  %v4501_v40 = vld [vmem:[#allocation21_spill] sm:$0xff] }
 0x52f   :  { %1992 = vmatpush1.msra.mxu0 %v3546_v41  ;;  %2063 = vmatpush1.msra.mxu1 %v3551_v42  ;;  %v4502_v41 = vmov 0.0   ;;  %v4503_v42 = vld [vmem:[#allocation22_spill] sm:$0xff] }
 0x530   :  { %1993 = vmatprep.subr.mxu0 %v3558_v43  ;;  %2064 = vmatprep.subr.mxu1 %v3563_v44  ;;  %v4504_v44 = vld [vmem:[#allocation40_spill] sm:$0xff] }
 0x531   :  { %1994 = vmatpush1.msra.mxu0 %v3570_v45  ;;  %2065 = vmatpush1.msra.mxu1 %v3575_v46 }
 0x532   :  { %1995 = vmatprep.subr.mxu0 %v3582_v47  ;;  %2066 = vmatprep.subr.mxu1 %v3587_v48  ;;  %v4505_v48 = vld [vmem:[#allocation42_spill] sm:$0xff] }
 0x533   :  { %1996 = vmatpush1.msra.mxu0 %v3594_v49  ;;  %2067 = vmatpush1.msra.mxu1 %v3599_v51 }
 0x534   :  { %1997 = vmatprep.subr.mxu0 %v3606_v52  ;;  %2068 = vmatprep.subr.mxu1 %v3611_v53 }
 0x535   :  { %1998 = vmatpush1.msra.mxu0 %v3616_v54  ;;  %2069 = vmatpush1.msra.mxu1 %v3623_v55  ;;  %v4506_v54 = vld [vmem:[#allocation43_spill] sm:$0xff] }
 0x536   :  { %1999 = vmatprep.subr.mxu0 %v3628_v57  ;;  %2070 = vmatprep.subr.mxu1 %v3633_v58  ;;  %v4507_v57 = vld [vmem:[#allocation41_spill] sm:$0xff] }
 0x537   :  { %2000 = vmatpush1.msra.mxu0 %v3640_v59  ;;  %2071 = vmatpush1.msra.mxu1 %v3645_v60 }
 0x538   :  { %2001 = vmatprep.subr.mxu0 %v3650_v61  ;;  %2072 = vmatprep.subr.mxu1 %v3657_v62 }
 0x539   :  { %2002 = vmatpush1.msra.mxu0 %v3662_v63  ;;  %2073 = vmatpush1.msra.mxu1 %v3667_v0 }
 0x53a   :  { %2003 = vmatprep.subr.mxu0 %v3674_v2  ;;  %2074 = vmatprep.subr.mxu1 %v3679_v3 }
 0x53b   :  { %2004 = vmatpush1.msra.mxu0 %v3686_v5  ;;  %2075 = vmatpush1.msra.mxu1 %v3691_v6 }
 0x53c   :  { %2005 = vmatprep.subr.mxu0 %v3698_v7  ;;  %2076 = vmatprep.subr.mxu1 %v3703_v8 }
 0x53d   :  { %2006 = vmatpush1.msra.mxu0 %v3710_v9  ;;  %2077 = vmatpush1.msra.mxu1 %v4486_v23  ;;  %v2209_v23 = vld [vmem:[%s4272_s2 + $0x168] sm:$0xff] }
 0x53e   :  { %2007 = vmatprep.subr.mxu0 %v4487_v22  ;;  %2078 = vmatprep.subr.mxu1 %v4488_v31  ;;  %v2211_v22 = vld [vmem:[%s4272_s2 + $0x178] sm:$0xff]  ;;  %v2208_v31 = vld [vmem:[%s4272_s2 + $0x160] sm:$0xff] }
 0x53f   :  { %2008 = vmatpush1.msra.mxu0 %v4489_v20  ;;  %2079 = vmatpush1.msra.mxu1 %v4490_v19  ;;  %v2210_v20 = vld [vmem:[%s4272_s2 + $0x170] sm:$0xff]  ;;  %v2205_v19 = vld [vmem:[%s4272_s2 + $0x148] sm:$0xff] }
 0x540   :  { %2009 = vmatprep.subr.mxu0 %v4491_v33  ;;  %2080 = vmatprep.subr.mxu1 %v4492_v30  ;;  %v2207_v33 = vld [vmem:[%s4272_s2 + $0x158] sm:$0xff]  ;;  %v2204_v30 = vld [vmem:[%s4272_s2 + $0x140] sm:$0xff] }
 0x541   :  { %2010 = vmatpush1.msra.mxu0 %v4493_v28  ;;  %2081 = vmatpush1.msra.mxu1 %v4494_v35  ;;  %v2206_v28 = vld [vmem:[%s4272_s2 + $0x150] sm:$0xff]  ;;  %v2201_v35 = vld [vmem:[%s4272_s2 + $0x128] sm:$0xff] }
 0x542   :  { %2011 = vmatprep.subr.mxu0 %v4495_v21  ;;  %2082 = vmatprep.subr.mxu1 %v4496_v29  ;;  %v2203_v21 = vld [vmem:[%s4272_s2 + $0x138] sm:$0xff]  ;;  %v2200_v29 = vld [vmem:[%s4272_s2 + $0x120] sm:$0xff] }
 0x543   :  { %2012 = vmatpush1.msra.mxu0 %v4497_v36  ;;  %2083 = vmatpush1.msra.mxu1 %v4498_v37  ;;  %v2202_v36 = vld [vmem:[%s4272_s2 + $0x130] sm:$0xff]  ;;  %v2197_v37 = vld [vmem:[%s4272_s2 + $0x108] sm:$0xff] }
 0x544   :  { %2013 = vmatprep.subr.mxu0 %v4499_v38  ;;  %2084 = vmatprep.subr.mxu1 %v4500_v39  ;;  %v2199_v38 = vld [vmem:[%s4272_s2 + $0x118] sm:$0xff]  ;;  %v2196_v39 = vld [vmem:[%s4272_s2 + $0x100] sm:$0xff] }
 0x545   :  { %2014 = vmatpush1.msra.mxu0 %v4501_v40  ;;  %2047 = vmatprep.mubr.f32.mxu0 %v4502_v41  ;;  %v2198_v40 = vld [vmem:[%s4272_s2 + $0x110] sm:$0xff] }
 0x546   :  { %2085 = vmatpush1.msra.mxu1 %v4503_v42  ;;  %2118 = vmatprep.mubr.f32.mxu1 %v4502_v41  ;;  %v2195_v42 = vld [vmem:[%s4272_s2 + $0xf8] sm:$0xff] }
 0x547   :  { %2228 = vmatprep.subr.mxu0 %v2225_v1  ;;  %2299 = vmatprep.subr.mxu1 %v2227_v50  ;;  %v2166_v1 = vld [vmem:[%s4272_s2 + $0x10] sm:$0xff] }
 0x5e6   :  { %v1804_v43 = vpop.f32.mrf.mxu0  ;;  %v1875_v51 = vpop.f32.mrf.mxu1 }
 0x5e7   :  { %v1880_v45 = vadd.f32 %v1804_v43, %v4504_v44  ;;  %v1882_v58 = vadd.f32 %v1875_v51, %v4507_v57  ;;  %v2192_v43 = vld [vmem:[%s4272_s2 + $0xe0] sm:$0xff]  ;;  %v2194_v44 = vld [vmem:[%s4272_s2 + $0xf0] sm:$0xff]  ;;  %v2187_v51 = vld [vmem:[%s4272_s2 + $0xb8] sm:$0xff] }
 0x5e8   :  { %v1806_v46 = vpop.f32.mrf.mxu0  ;;  %v1877_v53 = vpop.f32.mrf.mxu1  ;;  %v2180_v57 = vld [vmem:[%s4272_s2 + $0x80] sm:$0xff] }
 0x5e9   :  { %v2468_v47 = vmul.f32 -1.442695, %v1880_v45  ;;  %v1881_v49 = vadd.f32 %v1806_v46, %v4505_v48  ;;  %v1883_v55 = vadd.f32 %v1877_v53, %v4506_v54  ;;  %v2189_v45 = vld [vmem:[%s4272_s2 + $0xc8] sm:$0xff]  ;;  %v2191_v46 = vld [vmem:[%s4272_s2 + $0xd8] sm:$0xff]  ;;  %v2190_v48 = vld [vmem:[%s4272_s2 + $0xd0] sm:$0xff] }
 0x5ea   :  { %v2186_v53 = vld [vmem:[%s4272_s2 + $0xb0] sm:$0xff]  ;;  %v2181_v54 = vld [vmem:[%s4272_s2 + $0x88] sm:$0xff] }
 0x5eb   :  { %2614 = vpow2.f32 %v2468_v47  ;;  %v2469_v52 = vmul.f32 -1.442695, %v1881_v49  ;;  %v2470_v59 = vmul.f32 -1.442695, %v1883_v55  ;;  %v2188_v47 = vld [vmem:[%s4272_s2 + $0xc0] sm:$0xff]  ;;  %v2185_v49 = vld [vmem:[%s4272_s2 + $0xa8] sm:$0xff] }
 0x5ec   :  { %v2183_v55 = vld [vmem:[%s4272_s2 + $0x98] sm:$0xff] }
 0x5ed   :  { %2616 = vpow2.f32 %v2469_v52  ;;  %v2184_v52 = vld [vmem:[%s4272_s2 + $0xa0] sm:$0xff] }
 0x5ee   :  { %2618 = vtanh.f32 %v1882_v58  ;;  %v2182_v58 = vld [vmem:[%s4272_s2 + $0x90] sm:$0xff] }
 0x5ef   :  { %2620 = vpow2.f32 %v2470_v59  ;;  %v2177_v59 = vld [vmem:[%s4272_s2 + $0x68] sm:$0xff] }
 0x5f8   :  { %v2615_v60 = vpop.eup %2614 }
 0x5f9   :  { %v1890_v61 = vadd.f32 1.0, %v2615_v60  ;;  %v2179_v60 = vld [vmem:[%s4272_s2 + $0x78] sm:$0xff] }
 0x5fa   :  { %v2617_v62 = vpop.eup %2616 }
 0x5fb   :  { %2622 = vrcp.f32 %v1890_v61  ;;  %v1891_v63 = vadd.f32 1.0, %v2617_v62  ;;  %v2619_v0 = vpop.eup %2618  ;;  %v2176_v61 = vld [vmem:[%s4272_s2 + $0x60] sm:$0xff]  ;;  %v2178_v62 = vld [vmem:[%s4272_s2 + $0x70] sm:$0xff] }
 0x5fc   :  { %v2621_v2 = vpop.eup %2620 }
 0x5fd   :  { %2624 = vrcp.f32 %v1891_v63  ;;  %v1900_v7 = vadd.f32 1.0, %v2621_v2  ;;  %v2173_v63 = vld [vmem:[%s4272_s2 + $0x48] sm:$0xff]  ;;  %v2172_v2 = vld [vmem:[%s4272_s2 + $0x40] sm:$0xff] }
 0x5ff   :  { %2626 = vrcp.f32 %v1900_v7  ;;  %v2168_v7 = vld [vmem:[%s4272_s2 + $0x20] sm:$0xff] }
 0x608   :  { %v2623_v3 = vpop.eup %2622 }
 0x609   :  { %v1905_v5 = vmul.f32 %v2623_v3, %v2619_v0  ;;  %v2175_v0 = vld [vmem:[%s4272_s2 + $0x58] sm:$0xff]  ;;  %v2174_v3 = vld [vmem:[%s4272_s2 + $0x50] sm:$0xff] }
 0x60a   :  { %v2625_v6 = vpop.eup %2624 }
 0x60b   :  { %v1904_v8 = vmul.f32 %v2625_v6, %v3980_v16  ;;  %v2213_v16 = vld [vmem:[%s4272_s2 + $0x188] sm:$0xff]  ;;  %v2171_v6 = vld [vmem:[%s4272_s2 + $0x38] sm:$0xff] }
 0x60c   :  { %v2627_v11 = vpop.eup %2626 }
 0x60d   :  { %v4055_v9 = vadd.f32 %v1905_v5, %v1904_v8  ;;  %v2169_v5 = vld [vmem:[%s4272_s2 + $0x28] sm:$0xff]  ;;  %v2170_v8 = vld [vmem:[%s4272_s2 + $0x30] sm:$0xff] }
 0x60f   :  { %2628 = vtanh.f32 %v4055_v9 }
 0x61c   :  { %v2629_v13 = vpop.eup %2628 }
 0x61d   :  { %v1908_v26 = vmul.f32 %v2629_v13, %v2627_v11  ;;  %v2165_v11 = vld [vmem:[%s4272_s2 + $0x8] sm:$0xff]  ;;  %v2167_v13 = vld [vmem:[%s4272_s2 + $0x18] sm:$0xff] }
 0x61f   :  { %2471 = vst [vmem:[%s4274_s4 + $0x28] sm:$0xff] %v1908_v26  ;;  %2048 = vmatmul.mubr.f32.vlgmr.msra.gmra.mxu0 %v1908_v26  ;;  %2119 = vmatmul.mubr.f32.vlgmr.msra.gmra.mxu1 %v1908_v26  ;;  %v2164_v26 = vld [vmem:[%s4272_s2] sm:$0xff] }
 0x620   :  { %2292 = vmatprep.mubr.f32.mxu0 %v4502_v41  ;;  %2363 = vmatprep.mubr.f32.mxu1 %v4502_v41  ;;  %v2193_v41 = vld [vmem:[%s4272_s2 + $0xe8] sm:$0xff] }
 0x621   :  { %2229 = vmatpush1.msra.mxu0 %v2224_v18  ;;  %2300 = vmatpush1.msra.mxu1 %v2226_v17  ;;  %v4508_v18 = vld [vmem:[#allocation44_spill] sm:$0xff] }
 0x622   :  { %2230 = vmatprep.subr.mxu0 %v2221_v24  ;;  %2301 = vmatprep.subr.mxu1 %v2223_v15 }
 0x623   :  { %2231 = vmatpush1.msra.mxu0 %v2220_v14  ;;  %2302 = vmatpush1.msra.mxu1 %v2222_v12  ;;  %v4509_v14 = vld [vmem:[#allocation46_spill] sm:$0xff] }
 0x624   :  { %2232 = vmatprep.subr.mxu0 %v2217_v4  ;;  %2303 = vmatprep.subr.mxu1 %v2219_v27 }
 0x625   :  { %2233 = vmatpush1.msra.mxu0 %v2216_v25  ;;  %2304 = vmatpush1.msra.mxu1 %v2218_v10  ;;  %v4510_v10 = vld [vmem:[#allocation47_spill] sm:$0xff] }
 0x626   :  { %2234 = vmatprep.subr.mxu0 %v2213_v16  ;;  %2305 = vmatprep.subr.mxu1 %v2215_v32  ;;  %v4511_v32 = vld [vmem:[#allocation45_spill] sm:$0xff] }
 0x627   :  { %2235 = vmatpush1.msra.mxu0 %v2212_v34  ;;  %2306 = vmatpush1.msra.mxu1 %v2214_v56 }
 0x628   :  { %2236 = vmatprep.subr.mxu0 %v2209_v23  ;;  %2307 = vmatprep.subr.mxu1 %v2211_v22 }
 0x629   :  { %2237 = vmatpush1.msra.mxu0 %v2208_v31  ;;  %2308 = vmatpush1.msra.mxu1 %v2210_v20 }
 0x62a   :  { %2238 = vmatprep.subr.mxu0 %v2205_v19  ;;  %2309 = vmatprep.subr.mxu1 %v2207_v33 }
 0x62b   :  { %2239 = vmatpush1.msra.mxu0 %v2204_v30  ;;  %2310 = vmatpush1.msra.mxu1 %v2206_v28 }
 0x62c   :  { %2240 = vmatprep.subr.mxu0 %v2201_v35  ;;  %2311 = vmatprep.subr.mxu1 %v2203_v21 }
 0x62d   :  { %2241 = vmatpush1.msra.mxu0 %v2200_v29  ;;  %2312 = vmatpush1.msra.mxu1 %v2202_v36 }
 0x62e   :  { %2242 = vmatprep.subr.mxu0 %v2197_v37  ;;  %2313 = vmatprep.subr.mxu1 %v2199_v38 }
 0x62f   :  { %2243 = vmatpush1.msra.mxu0 %v2196_v39  ;;  %2314 = vmatpush1.msra.mxu1 %v2198_v40 }
 0x630   :  { %2244 = vmatprep.subr.mxu0 %v2193_v41  ;;  %2315 = vmatprep.subr.mxu1 %v2195_v42  ;;  %v4512_v41 = vld [vmem:[#allocation48_spill] sm:$0xff] }
 0x631   :  { %2245 = vmatpush1.msra.mxu0 %v2192_v43  ;;  %2316 = vmatpush1.msra.mxu1 %v2194_v44 }
 0x632   :  { %2246 = vmatprep.subr.mxu0 %v2189_v45  ;;  %2317 = vmatprep.subr.mxu1 %v2191_v46  ;;  %v4513_v45 = vld [vmem:[#allocation50_spill] sm:$0xff] }
 0x633   :  { %2247 = vmatpush1.msra.mxu0 %v2188_v47  ;;  %2318 = vmatpush1.msra.mxu1 %v2190_v48 }
 0x634   :  { %2248 = vmatprep.subr.mxu0 %v2185_v49  ;;  %2319 = vmatprep.subr.mxu1 %v2187_v51  ;;  %v4514_v49 = vld [vmem:[#allocation51_spill] sm:$0xff] }
 0x635   :  { %2249 = vmatpush1.msra.mxu0 %v2184_v52  ;;  %2320 = vmatpush1.msra.mxu1 %v2186_v53  ;;  %v4515_v52 = vld [vmem:[#allocation49_spill] sm:$0xff] }
 0x636   :  { %2250 = vmatprep.subr.mxu0 %v2181_v54  ;;  %2321 = vmatprep.subr.mxu1 %v2183_v55 }
 0x637   :  { %2251 = vmatpush1.msra.mxu0 %v2180_v57  ;;  %2322 = vmatpush1.msra.mxu1 %v2182_v58 }
 0x638   :  { %2252 = vmatprep.subr.mxu0 %v2177_v59  ;;  %2323 = vmatprep.subr.mxu1 %v2179_v60 }
 0x639   :  { %2253 = vmatpush1.msra.mxu0 %v2176_v61  ;;  %2324 = vmatpush1.msra.mxu1 %v2178_v62 }
 0x63a   :  { %2254 = vmatprep.subr.mxu0 %v2173_v63  ;;  %2325 = vmatprep.subr.mxu1 %v2175_v0 }
 0x63b   :  { %2255 = vmatpush1.msra.mxu0 %v2172_v2  ;;  %2326 = vmatpush1.msra.mxu1 %v2174_v3 }
 0x63c   :  { %2256 = vmatprep.subr.mxu0 %v2169_v5  ;;  %2327 = vmatprep.subr.mxu1 %v2171_v6 }
 0x63d   :  { %2257 = vmatpush1.msra.mxu0 %v2168_v7  ;;  %2328 = vmatpush1.msra.mxu1 %v2170_v8 }
 0x63e   :  { %2258 = vmatprep.subr.mxu0 %v2165_v11  ;;  %2329 = vmatprep.subr.mxu1 %v2167_v13 }
 0x63f   :  { %2259 = vmatpush1.msra.mxu0 %v2164_v26  ;;  %2330 = vmatpush1.msra.mxu1 %v2166_v1 }
 0x6df   :  { %v2049_v50 = vpop.f32.mrf.mxu0  ;;  %v2120_v4 = vpop.f32.mrf.mxu1 }
 0x6e0   :  { %v2125_v17 = vadd.f32 %v2049_v50, %v4508_v18  ;;  %v2127_v34 = vadd.f32 %v2120_v4, %v4511_v32 }
 0x6e1   :  { %v2051_v24 = vpop.f32.mrf.mxu0  ;;  %v2122_v25 = vpop.f32.mrf.mxu1 }
 0x6e2   :  { %v2472_v15 = vmul.f32 -1.442695, %v2125_v17  ;;  %v2126_v12 = vadd.f32 %v2051_v24, %v4509_v14  ;;  %v2128_v16 = vadd.f32 %v2122_v25, %v4510_v10 }
 0x6e4   :  { %2630 = vpow2.f32 %v2472_v15  ;;  %v2473_v27 = vmul.f32 -1.442695, %v2126_v12  ;;  %v2474_v56 = vmul.f32 -1.442695, %v2128_v16 }
 0x6e6   :  { %2632 = vpow2.f32 %v2473_v27 }
 0x6e7   :  { %2634 = vtanh.f32 %v2127_v34 }
 0x6e8   :  { %2636 = vpow2.f32 %v2474_v56 }
 0x6f1   :  { %v2631_v23 = vpop.eup %2630 }
 0x6f2   :  { %v2135_v22 = vadd.f32 1.0, %v2631_v23 }
 0x6f3   :  { %v2633_v31 = vpop.eup %2632 }
 0x6f4   :  { %2638 = vrcp.f32 %v2135_v22  ;;  %v2136_v20 = vadd.f32 1.0, %v2633_v31  ;;  %v2635_v19 = vpop.eup %2634 }
 0x6f5   :  { %v2637_v33 = vpop.eup %2636 }
 0x6f6   :  { %2640 = vrcp.f32 %v2136_v20  ;;  %v2145_v21 = vadd.f32 1.0, %v2637_v33 }
 0x6f8   :  { %2642 = vrcp.f32 %v2145_v21 }
 0x701   :  { %v2639_v30 = vpop.eup %2638 }
 0x702   :  { %v2150_v28 = vmul.f32 %v2639_v30, %v2635_v19 }
 0x703   :  { %v2641_v35 = vpop.eup %2640 }
 0x704   :  { %v2149_v29 = vmul.f32 %v2641_v35, %v4055_v9 }
 0x705   :  { %v2643_v37 = vpop.eup %2642 }
 0x706   :  { %v2151_v36 = vadd.f32 %v2150_v28, %v2149_v29 }
 0x708   :  { %2644 = vtanh.f32 %v2151_v36 }
 0x715   :  { %v2645_v38 = vpop.eup %2644 }
 0x716   :  { %v2153_v39 = vmul.f32 %v2645_v38, %v2643_v37 }
 0x718   :  { %2475 = vst [vmem:[%s4274_s4 + $0x30] sm:$0xff] %v2153_v39  ;;  %2293 = vmatmul.mubr.f32.vlgmr.msra.gmra.mxu0 %v2153_v39  ;;  %2364 = vmatmul.mubr.f32.vlgmr.msra.gmra.mxu1 %v2153_v39 }
 0x7d8   :  { %v2294_v40 = vpop.f32.mrf.mxu0  ;;  %v2365_v9 = vpop.f32.mrf.mxu1 }
 0x7d9   :  { %v2370_v42 = vadd.f32 %v2294_v40, %v4512_v41  ;;  %v2372_v53 = vadd.f32 %v2365_v9, %v4515_v52 }
 0x7da   :  { %v2296_v43 = vpop.f32.mrf.mxu0  ;;  %v2367_v48 = vpop.f32.mrf.mxu1 }
 0x7db   :  { %v2476_v44 = vmul.f32 -1.442695, %v2370_v42  ;;  %v2371_v46 = vadd.f32 %v2296_v43, %v4513_v45  ;;  %v2373_v51 = vadd.f32 %v2367_v48, %v4514_v49 }
 0x7dd   :  { %2646 = vpow2.f32 %v2476_v44  ;;  %v2477_v47 = vmul.f32 -1.442695, %v2371_v46  ;;  %v2478_v54 = vmul.f32 -1.442695, %v2373_v51 }
 0x7df   :  { %2648 = vpow2.f32 %v2477_v47 }
 0x7e0   :  { %2650 = vtanh.f32 %v2372_v53 }
 0x7e1   :  { %2652 = vpow2.f32 %v2478_v54 }
 0x7ea   :  { %v2647_v55 = vpop.eup %2646 }
 0x7eb   :  { %v2380_v57 = vadd.f32 1.0, %v2647_v55 }
 0x7ec   :  { %v2649_v58 = vpop.eup %2648 }
 0x7ed   :  { %2654 = vrcp.f32 %v2380_v57  ;;  %v2381_v59 = vadd.f32 1.0, %v2649_v58  ;;  %v2651_v60 = vpop.eup %2650 }
 0x7ee   :  { %v2653_v61 = vpop.eup %2652 }
 0x7ef   :  { %2656 = vrcp.f32 %v2381_v59  ;;  %v2390_v2 = vadd.f32 1.0, %v2653_v61 }
 0x7f1   :  { %2658 = vrcp.f32 %v2390_v2 }
 0x7fa   :  { %v2655_v62 = vpop.eup %2654 }
 0x7fb   :  { %v2395_v63 = vmul.f32 %v2655_v62, %v2651_v60 }
 0x7fc   :  { %v2657_v0 = vpop.eup %2656 }
 0x7fd   :  { %v2394_v3 = vmul.f32 %v2657_v0, %v2151_v36 }
 0x7fe   :  { %v2659_v6 = vpop.eup %2658 }
 0x7ff   :  { %v2396_v5 = vadd.f32 %v2395_v63, %v2394_v3 }
 0x801   :  { %2660 = vtanh.f32 %v2396_v5 }
 0x80e   :  { %v2661_v7 = vpop.eup %2660 }
 0x80f   :  { %v2398_v8 = vmul.f32 %v2661_v7, %v2659_v6 }
 0x811   :  { %2479 = vst [vmem:[%s4274_s4 + $0x38] sm:$0xff] %v2398_v8 }

</bundles_post_ra>
